<compile_context>
chip_gen: v7x
topology: tpu7x:2x2x1
jax: 0.10.0
libtpu: 0.0.40
codegen_flags: <defaults>
</compile_context>

<pallas_src>
import functools

import jax
import jax.numpy as jnp
from jax.experimental import pallas as pl
from jax.experimental.pallas import tpu as pltpu

_LANE = 128          # lane width / minimum tile granularity
_MXU = 256           # v6e/v7x MXU width; prefer M tiles that are multiples
_MAX_TB = 1024       # largest batch tile we ever use


def _round_up(n: int, m: int) -> int:
    return ((n + m - 1) // m) * m


def _round_down(n: int, m: int) -> int:
    return (n // m) * m


def _vmem_limit_bytes() -> int:
    """Generation-aware VMEM request (physical: 128 MiB v5e/v6e, 64 MiB v7x)."""
    try:
        cap = int(pltpu.get_tpu_info().vmem_capacity_bytes)
    except Exception:
        # Unknown chip: assume the smallest VMEM (64 MiB, v7x) so the request
        # never exceeds physical capacity.
        cap = 64 * 1024 * 1024
    if cap >= 100 * 1024 * 1024:
        return 112 * 1024 * 1024          # 128-MiB-class chips (v5e / v6e)
    return (cap * 3) // 4                 # ~48 MiB on 64-MiB v7x


def _pick_batch_tile(tb_req, B, D_in_p, H_p, D_out_p, out_itemsize,
                     vmem_limit, weight_buffers):
    """Largest batch tile that fits the per-step VMEM budget (plus caps)."""
    bufs = 1 if weight_buffers == 1 else 2
    # Resident weights (bf16) + biases (f32), times their buffer count.
    resident = bufs * ((D_in_p * H_p + H_p * H_p + H_p * D_out_p) * 2
                       + (2 * H_p + D_out_p) * 4)
    # Per-batch-row VMEM: double-buffered bf16 x tile, double-buffered out
    # tile, plus the f32/bf16 intermediates live inside the kernel body.
    per_row = (2 * 2 * D_in_p
               + 2 * out_itemsize * D_out_p
               + 12 * H_p + 4 * D_out_p)
    budget = vmem_limit - resident - (4 << 20)   # headroom for Mosaic scratch
    if budget < per_row * _LANE:
        # TODO(synk): implement the weight-streaming path (inner
        # pltpu.emit_pipeline over W2/W3 output-feature slabs) for hidden
        # sizes whose resident bf16 weights exceed the VMEM budget.
        raise NotImplementedError(
            "MimoMLP Pallas kernel: resident weights exceed the VMEM budget "
            "on this chip; the weight-streaming path is not implemented.")
    tb = min(int(tb_req), _MAX_TB, budget // per_row)
    # Megacore: keep >= 2 batch tiles whenever possible so the 'parallel' grid
    # axis can be split across both TensorCores on 2-TC chips (v7x). The extra
    # grid step costs ~0.35 us on 1-TC chips, which is negligible.
    B128 = _round_up(B, _LANE)
    half = _round_down(B128 // 2, _LANE)
    if half >= _LANE:
        tb = min(tb, half)
    tb = min(tb, B128)
    # Prefer 256-aligned M tiles (v6e/v7x 256-wide MXU); 128 is the floor.
    if tb >= _MXU:
        tb = _round_down(tb, _MXU)
    else:
        tb = max(_LANE, _round_down(tb, _LANE))
    return tb


def _mlp_kernel(x_ref, w1_ref, b1_ref, w2_ref, b2_ref, w3_ref, b3_ref, o_ref):
    # Layer 1: Linear + ReLU  (bf16 MXU operands, f32 accumulation, f32 bias)
    h = jnp.dot(x_ref[...], w1_ref[...], preferred_element_type=jnp.float32)
    h = jnp.maximum(h + b1_ref[...], 0.0)
    # Layer 2: Linear + ReLU
    h = jnp.dot(h.astype(w2_ref.dtype), w2_ref[...],
                preferred_element_type=jnp.float32)
    h = jnp.maximum(h + b2_ref[...], 0.0)
    # Layer 3: Linear (no activation; matches the Sequential's last layer)
    o = jnp.dot(h.astype(w3_ref.dtype), w3_ref[...],
                preferred_element_type=jnp.float32)
    o_ref[...] = (o + b3_ref[...]).astype(o_ref.dtype)


def _const_spec(shape, pipeline_mode):
    """BlockSpec for a grid-invariant (resident) operand."""
    if pipeline_mode is None:
        return pl.BlockSpec(shape, lambda i: (0, 0))
    return pl.BlockSpec(shape, lambda i: (0, 0), pipeline_mode=pipeline_mode)


@functools.partial(jax.jit,
                   static_argnames=("tb_req", "weight_buffers", "out_dtype"))
def _mimo_mlp_impl(x, w1, b1, w2, b2, w3, b3, *, tb_req, weight_buffers,
                   out_dtype):
    """x: [B, D_in]; wK: [in, out]; bK: [1, out].  Returns [B, D_out]."""
    out_dtype = jnp.dtype(out_dtype)
    B, D_in = x.shape
    H = w1.shape[1]
    D_out = w3.shape[1]

    # Lane-dense (128-aligned) feature dims.
    D_in_p = _round_up(D_in, _LANE)
    H_p = _round_up(H, _LANE)
    D_out_p = _round_up(D_out, _LANE)

    vmem_limit = _vmem_limit_bytes()
    tb = _pick_batch_tile(tb_req, B, D_in_p, H_p, D_out_p,
                          out_dtype.itemsize, vmem_limit, weight_buffers)
    B_p = _round_up(B, tb)

    f32, bf16 = jnp.float32, jnp.bfloat16
    xp = jnp.pad(x, ((0, B_p - B), (0, D_in_p - D_in))).astype(bf16)
    w1p = jnp.pad(w1, ((0, D_in_p - D_in), (0, H_p - H))).astype(bf16)
    w2p = jnp.pad(w2, ((0, H_p - H), (0, H_p - H))).astype(bf16)
    w3p = jnp.pad(w3, ((0, H_p - H), (0, D_out_p - D_out))).astype(bf16)
    b1p = jnp.pad(b1, ((0, 0), (0, H_p - H))).astype(f32)
    b2p = jnp.pad(b2, ((0, 0), (0, H_p - H))).astype(f32)
    b3p = jnp.pad(b3, ((0, 0), (0, D_out_p - D_out))).astype(f32)

    grid = (B_p // tb,)
    weight_pm = None if weight_buffers is None else pl.Buffered(weight_buffers)

    in_specs = [
        pl.BlockSpec((tb, D_in_p), lambda i: (i, 0)),   # x tile (pipelined)
        _const_spec((D_in_p, H_p), weight_pm),          # W1 (resident)
        _const_spec((1, H_p), weight_pm),               # b1
        _const_spec((H_p, H_p), weight_pm),             # W2
        _const_spec((1, H_p), weight_pm),               # b2
        _const_spec((H_p, D_out_p), weight_pm),         # W3
        _const_spec((1, D_out_p), weight_pm),           # b3
    ]
    out_specs = pl.BlockSpec((tb, D_out_p), lambda i: (i, 0))

    flops = 2 * B_p * (D_in_p * H_p + H_p * H_p + H_p * D_out_p)
    bytes_accessed = (
        B_p * D_in_p * 2                                    # x (bf16)
        + (D_in_p * H_p + H_p * H_p + H_p * D_out_p) * 2    # weights (bf16)
        + (2 * H_p + D_out_p) * 4                           # biases (f32)
        + B_p * D_out_p * out_dtype.itemsize                # output
    )
    cost = pl.CostEstimate(flops=flops, transcendentals=0,
                           bytes_accessed=bytes_accessed)

    out_p = pl.pallas_call(
        _mlp_kernel,
        out_shape=jax.ShapeDtypeStruct((B_p, D_out_p), out_dtype),
        grid_spec=pltpu.PrefetchScalarGridSpec(
            num_scalar_prefetch=0,
            grid=grid,
            in_specs=in_specs,
            out_specs=out_specs,
        ),
        compiler_params=pltpu.CompilerParams(
            dimension_semantics=("parallel",),
            vmem_limit_bytes=vmem_limit,
            # Let XLA fuse the pad + bf16 cast of the operands into the
            # pallas_call instead of materializing a padded copy in HBM.
            allow_input_fusion=[True] * 7,
        ),
        cost_estimate=cost,
    )(xp, w1p, b1p, w2p, b2p, w3p, b3p)

    return out_p[:B, :D_out]


def mimo_mlp_pallas(x, w1, b1, w2, b2, w3, b3, *, tb=512, out_dtype=None):
    """Forward pass of the 3-layer MLP (Linear/ReLU/Linear/ReLU/Linear)."""
    out_dtype = jnp.dtype(x.dtype if out_dtype is None else out_dtype)
    tb = max(int(tb), _LANE)
    try:
        # Primary path: single-buffer the grid-invariant weights/biases
        # (constant index map) to reclaim VMEM for a larger batch tile.
        return _mimo_mlp_impl(x, w1, b1, w2, b2, w3, b3,
                              tb_req=tb, weight_buffers=1, out_dtype=out_dtype)
    except NotImplementedError:
        raise  # weight-streaming guard: never mask or silently retry this
    except Exception:
        # Some JAX/Mosaic versions reject pipeline_mode=pl.Buffered(1) on the
        # top-level pallas_call pipeline; the rejection's exception type is
        # version-dependent, so retry once with default (double) buffering.
        # Genuine shape/lowering errors are re-raised unchanged by the retry
        # (the fallback changes only the buffering), so nothing is masked.
        return _mimo_mlp_impl(x, w1, b1, w2, b2, w3, b3,
                              tb_req=tb, weight_buffers=None,
                              out_dtype=out_dtype)


def _reference_mlp(x, w1, b1, w2, b2, w3, b3):
    h = jnp.maximum(x @ w1 + b1, 0.0)
    h = jnp.maximum(h @ w2 + b2, 0.0)
    return h @ w3 + b3


if __name__ == "__main__":
    # Small shapes consistent with an MLP forward: batch=16, D_in=32, H=64, D_out=16.
    B, D_in, H, D_out = 16, 32, 64, 16

    key = jax.random.PRNGKey(0)
    kx, k1, k2, k3, kb1, kb2, kb3 = jax.random.split(key, 7)

    x = jax.random.normal(kx, (B, D_in), dtype=jnp.float32)

    # Parameters with torch.nn.Linear shapes pre-transposed to [in, out];
    # biases kept as [1, out] for 2-D broadcast.
    w1 = jax.random.normal(k1, (D_in, H), dtype=jnp.float32) * 0.1
    b1 = jax.random.normal(kb1, (1, H), dtype=jnp.float32) * 0.1
    w2 = jax.random.normal(k2, (H, H), dtype=jnp.float32) * 0.1
    b2 = jax.random.normal(kb2, (1, H), dtype=jnp.float32) * 0.1
    w3 = jax.random.normal(k3, (H, D_out), dtype=jnp.float32) * 0.1
    b3 = jax.random.normal(kb3, (1, D_out), dtype=jnp.float32) * 0.1

    out = mimo_mlp_pallas(x, w1, b1, w2, b2, w3, b3)
    out = jax.block_until_ready(out)

    ref = _reference_mlp(x, w1, b1, w2, b2, w3, b3)
    assert out.shape == (B, D_out)
    # bf16 MXU operands with f32 accumulation -> ~1% deviation vs the pure-f32
    # reference; tolerance reflects that while still catching real bugs.
    assert jnp.allclose(out, ref, atol=3e-2, rtol=3e-2), "mismatch vs reference"

    print("KERNEL_OK")
</pallas_src>

<mosaic_0001>
module attributes {stable_mosaic.version = 11 : i64} {
  func.func @_mlp_kernel(%arg0: i32, %arg1: memref<128x128xbf16, #tpu.memory_space<vmem>>, %arg2: memref<128x128xbf16, #tpu.memory_space<vmem>>, %arg3: memref<1x128xf32, #tpu.memory_space<vmem>>, %arg4: memref<128x128xbf16, #tpu.memory_space<vmem>>, %arg5: memref<1x128xf32, #tpu.memory_space<vmem>>, %arg6: memref<128x128xbf16, #tpu.memory_space<vmem>>, %arg7: memref<1x128xf32, #tpu.memory_space<vmem>>, %arg8: memref<128x128xf32, #tpu.memory_space<vmem>>) attributes {dimension_semantics = [#tpu.dimension_semantics<parallel>], iteration_bounds = array<i64: 1>, scalar_prefetch = 0 : i64, scratch_operands = 0 : i64, tpu.core_type = #tpu.core_type<tc>, window_params = [{transform_indices = @transform_0, window_bounds = array<i64: 128, 128>}, {pipeline_mode = #tpu.pipeline_mode<synchronous>, transform_indices = @transform_1, window_bounds = array<i64: 128, 128>}, {pipeline_mode = #tpu.pipeline_mode<synchronous>, transform_indices = @transform_2, window_bounds = array<i64: 1, 128>}, {pipeline_mode = #tpu.pipeline_mode<synchronous>, transform_indices = @transform_3, window_bounds = array<i64: 128, 128>}, {pipeline_mode = #tpu.pipeline_mode<synchronous>, transform_indices = @transform_4, window_bounds = array<i64: 1, 128>}, {pipeline_mode = #tpu.pipeline_mode<synchronous>, transform_indices = @transform_5, window_bounds = array<i64: 128, 128>}, {pipeline_mode = #tpu.pipeline_mode<synchronous>, transform_indices = @transform_6, window_bounds = array<i64: 1, 128>}, {transform_indices = @transform_7, window_bounds = array<i64: 128, 128>}]} {
    %c0 = arith.constant 0 : index
    %c0_0 = arith.constant 0 : index
    %0 = vector.load %arg1[%c0, %c0_0] : memref<128x128xbf16, #tpu.memory_space<vmem>>, vector<128x128xbf16>
    %c0_1 = arith.constant 0 : index
    %c0_2 = arith.constant 0 : index
    %1 = vector.load %arg2[%c0_1, %c0_2] : memref<128x128xbf16, #tpu.memory_space<vmem>>, vector<128x128xbf16>
    %cst = arith.constant dense<0.000000e+00> : vector<128x128xf32>
    %2 = tpu.matmul %0, %1, %cst {dimension_numbers = #tpu.dot_dimension_numbers<[1], [0], [0], [1], [0, 0, 1, 1], [], []>} : vector<128x128xbf16>, vector<128x128xbf16>, vector<128x128xf32> -> vector<128x128xf32>
    %c0_3 = arith.constant 0 : index
    %c0_4 = arith.constant 0 : index
    %3 = vector.load %arg3[%c0_3, %c0_4] : memref<1x128xf32, #tpu.memory_space<vmem>>, vector<1x128xf32>
    %4 = vector.broadcast %3 : vector<1x128xf32> to vector<128x128xf32>
    %5 = arith.addf %2, %4 : vector<128x128xf32>
    %cst_5 = arith.constant 0.000000e+00 : f32
    %6 = vector.broadcast %cst_5 : f32 to vector<128x128xf32>
    %7 = arith.maximumf %5, %6 : vector<128x128xf32>
    %8 = arith.truncf %7 : vector<128x128xf32> to vector<128x128xbf16>
    %c0_6 = arith.constant 0 : index
    %c0_7 = arith.constant 0 : index
    %9 = vector.load %arg4[%c0_6, %c0_7] : memref<128x128xbf16, #tpu.memory_space<vmem>>, vector<128x128xbf16>
    %cst_8 = arith.constant dense<0.000000e+00> : vector<128x128xf32>
    %10 = tpu.matmul %8, %9, %cst_8 {dimension_numbers = #tpu.dot_dimension_numbers<[1], [0], [0], [1], [0, 0, 1, 1], [], []>} : vector<128x128xbf16>, vector<128x128xbf16>, vector<128x128xf32> -> vector<128x128xf32>
    %c0_9 = arith.constant 0 : index
    %c0_10 = arith.constant 0 : index
    %11 = vector.load %arg5[%c0_9, %c0_10] : memref<1x128xf32, #tpu.memory_space<vmem>>, vector<1x128xf32>
    %12 = vector.broadcast %11 : vector<1x128xf32> to vector<128x128xf32>
    %13 = arith.addf %10, %12 : vector<128x128xf32>
    %cst_11 = arith.constant 0.000000e+00 : f32
    %14 = vector.broadcast %cst_11 : f32 to vector<128x128xf32>
    %15 = arith.maximumf %13, %14 : vector<128x128xf32>
    %16 = arith.truncf %15 : vector<128x128xf32> to vector<128x128xbf16>
    %c0_12 = arith.constant 0 : index
    %c0_13 = arith.constant 0 : index
    %17 = vector.load %arg6[%c0_12, %c0_13] : memref<128x128xbf16, #tpu.memory_space<vmem>>, vector<128x128xbf16>
    %cst_14 = arith.constant dense<0.000000e+00> : vector<128x128xf32>
    %18 = tpu.matmul %16, %17, %cst_14 {dimension_numbers = #tpu.dot_dimension_numbers<[1], [0], [0], [1], [0, 0, 1, 1], [], []>} : vector<128x128xbf16>, vector<128x128xbf16>, vector<128x128xf32> -> vector<128x128xf32>
    %c0_15 = arith.constant 0 : index
    %c0_16 = arith.constant 0 : index
    %19 = vector.load %arg7[%c0_15, %c0_16] : memref<1x128xf32, #tpu.memory_space<vmem>>, vector<1x128xf32>
    %20 = vector.broadcast %19 : vector<1x128xf32> to vector<128x128xf32>
    %21 = arith.addf %18, %20 : vector<128x128xf32>
    %c0_17 = arith.constant 0 : index
    %c0_18 = arith.constant 0 : index
    %22 = vector.load %arg8[%c0_17, %c0_18] : memref<128x128xf32, #tpu.memory_space<vmem>>, vector<128x128xf32>
    tpu.vector_store %arg8[%c0_17, %c0_18], %21 {strides = array<i32>} : memref<128x128xf32, #tpu.memory_space<vmem>>, vector<128x128xf32>,
    return
  }
  func.func @transform_0(%arg0: i32) -> (i32, i32) {
    %c0_i32 = arith.constant 0 : i32
    %c0_i32_0 = arith.constant 0 : i32
    return %arg0, %c0_i32 : i32, i32
  }
  func.func @transform_1(%arg0: i32) -> (i32, i32) {
    %c0_i32 = arith.constant 0 : i32
    %c0_i32_0 = arith.constant 0 : i32
    %c0_i32_1 = arith.constant 0 : i32
    return %c0_i32, %c0_i32_0 : i32, i32
  }
  func.func @transform_2(%arg0: i32) -> (i32, i32) {
    %c0_i32 = arith.constant 0 : i32
    %c0_i32_0 = arith.constant 0 : i32
    %c0_i32_1 = arith.constant 0 : i32
    return %c0_i32, %c0_i32_0 : i32, i32
  }
  func.func @transform_3(%arg0: i32) -> (i32, i32) {
    %c0_i32 = arith.constant 0 : i32
    %c0_i32_0 = arith.constant 0 : i32
    %c0_i32_1 = arith.constant 0 : i32
    return %c0_i32, %c0_i32_0 : i32, i32
  }
  func.func @transform_4(%arg0: i32) -> (i32, i32) {
    %c0_i32 = arith.constant 0 : i32
    %c0_i32_0 = arith.constant 0 : i32
    %c0_i32_1 = arith.constant 0 : i32
    return %c0_i32, %c0_i32_0 : i32, i32
  }
  func.func @transform_5(%arg0: i32) -> (i32, i32) {
    %c0_i32 = arith.constant 0 : i32
    %c0_i32_0 = arith.constant 0 : i32
    %c0_i32_1 = arith.constant 0 : i32
    return %c0_i32, %c0_i32_0 : i32, i32
  }
  func.func @transform_6(%arg0: i32) -> (i32, i32) {
    %c0_i32 = arith.constant 0 : i32
    %c0_i32_0 = arith.constant 0 : i32
    %c0_i32_1 = arith.constant 0 : i32
    return %c0_i32, %c0_i32_0 : i32, i32
  }
  func.func @transform_7(%arg0: i32) -> (i32, i32) {
    %c0_i32 = arith.constant 0 : i32
    %c0_i32_0 = arith.constant 0 : i32
    return %arg0, %c0_i32 : i32, i32
  }
}

module attributes {stable_mosaic.version = 11 : i64} {
  func.func @_mlp_kernel(%arg0: i32, %arg1: memref<128x128xbf16, #tpu.memory_space<vmem>>, %arg2: memref<128x128xbf16, #tpu.memory_space<vmem>>, %arg3: memref<1x128xf32, #tpu.memory_space<vmem>>, %arg4: memref<128x128xbf16, #tpu.memory_space<vmem>>, %arg5: memref<1x128xf32, #tpu.memory_space<vmem>>, %arg6: memref<128x128xbf16, #tpu.memory_space<vmem>>, %arg7: memref<1x128xf32, #tpu.memory_space<vmem>>, %arg8: memref<128x128xf32, #tpu.memory_space<vmem>>) attributes {dimension_semantics = [#tpu.dimension_semantics<parallel>], iteration_bounds = array<i64: 1>, scalar_prefetch = 0 : i64, scratch_operands = 0 : i64, tpu.core_type = #tpu.core_type<tc>, window_params = [{transform_indices = @transform_0, window_bounds = array<i64: 128, 128>}, {pipeline_mode = #tpu.pipeline_mode<synchronous>, transform_indices = @transform_1, window_bounds = array<i64: 128, 128>}, {pipeline_mode = #tpu.pipeline_mode<synchronous>, transform_indices = @transform_2, window_bounds = array<i64: 1, 128>}, {pipeline_mode = #tpu.pipeline_mode<synchronous>, transform_indices = @transform_3, window_bounds = array<i64: 128, 128>}, {pipeline_mode = #tpu.pipeline_mode<synchronous>, transform_indices = @transform_4, window_bounds = array<i64: 1, 128>}, {pipeline_mode = #tpu.pipeline_mode<synchronous>, transform_indices = @transform_5, window_bounds = array<i64: 128, 128>}, {pipeline_mode = #tpu.pipeline_mode<synchronous>, transform_indices = @transform_6, window_bounds = array<i64: 1, 128>}, {transform_indices = @transform_7, window_bounds = array<i64: 128, 128>}]} {
    %c0 = arith.constant 0 : index
    %c0_0 = arith.constant 0 : index
    %0 = vector.load %arg1[%c0, %c0_0] : memref<128x128xbf16, #tpu.memory_space<vmem>>, vector<128x128xbf16>
    %c0_1 = arith.constant 0 : index
    %c0_2 = arith.constant 0 : index
    %1 = vector.load %arg2[%c0_1, %c0_2] : memref<128x128xbf16, #tpu.memory_space<vmem>>, vector<128x128xbf16>
    %cst = arith.constant dense<0.000000e+00> : vector<128x128xf32>
    %2 = tpu.matmul %0, %1, %cst {dimension_numbers = #tpu.dot_dimension_numbers<[1], [0], [0], [1], [0, 0, 1, 1], [], []>} : vector<128x128xbf16>, vector<128x128xbf16>, vector<128x128xf32> -> vector<128x128xf32>
    %c0_3 = arith.constant 0 : index
    %c0_4 = arith.constant 0 : index
    %3 = vector.load %arg3[%c0_3, %c0_4] : memref<1x128xf32, #tpu.memory_space<vmem>>, vector<1x128xf32>
    %4 = vector.broadcast %3 : vector<1x128xf32> to vector<128x128xf32>
    %5 = arith.addf %2, %4 : vector<128x128xf32>
    %cst_5 = arith.constant 0.000000e+00 : f32
    %6 = vector.broadcast %cst_5 : f32 to vector<128x128xf32>
    %7 = arith.maximumf %5, %6 : vector<128x128xf32>
    %8 = arith.truncf %7 : vector<128x128xf32> to vector<128x128xbf16>
    %c0_6 = arith.constant 0 : index
    %c0_7 = arith.constant 0 : index
    %9 = vector.load %arg4[%c0_6, %c0_7] : memref<128x128xbf16, #tpu.memory_space<vmem>>, vector<128x128xbf16>
    %cst_8 = arith.constant dense<0.000000e+00> : vector<128x128xf32>
    %10 = tpu.matmul %8, %9, %cst_8 {dimension_numbers = #tpu.dot_dimension_numbers<[1], [0], [0], [1], [0, 0, 1, 1], [], []>} : vector<128x128xbf16>, vector<128x128xbf16>, vector<128x128xf32> -> vector<128x128xf32>
    %c0_9 = arith.constant 0 : index
    %c0_10 = arith.constant 0 : index
    %11 = vector.load %arg5[%c0_9, %c0_10] : memref<1x128xf32, #tpu.memory_space<vmem>>, vector<1x128xf32>
    %12 = vector.broadcast %11 : vector<1x128xf32> to vector<128x128xf32>
    %13 = arith.addf %10, %12 : vector<128x128xf32>
    %cst_11 = arith.constant 0.000000e+00 : f32
    %14 = vector.broadcast %cst_11 : f32 to vector<128x128xf32>
    %15 = arith.maximumf %13, %14 : vector<128x128xf32>
    %16 = arith.truncf %15 : vector<128x128xf32> to vector<128x128xbf16>
    %c0_12 = arith.constant 0 : index
    %c0_13 = arith.constant 0 : index
    %17 = vector.load %arg6[%c0_12, %c0_13] : memref<128x128xbf16, #tpu.memory_space<vmem>>, vector<128x128xbf16>
    %cst_14 = arith.constant dense<0.000000e+00> : vector<128x128xf32>
    %18 = tpu.matmul %16, %17, %cst_14 {dimension_numbers = #tpu.dot_dimension_numbers<[1], [0], [0], [1], [0, 0, 1, 1], [], []>} : vector<128x128xbf16>, vector<128x128xbf16>, vector<128x128xf32> -> vector<128x128xf32>
    %c0_15 = arith.constant 0 : index
    %c0_16 = arith.constant 0 : index
    %19 = vector.load %arg7[%c0_15, %c0_16] : memref<1x128xf32, #tpu.memory_space<vmem>>, vector<1x128xf32>
    %20 = vector.broadcast %19 : vector<1x128xf32> to vector<128x128xf32>
    %21 = arith.addf %18, %20 : vector<128x128xf32>
    %c0_17 = arith.constant 0 : index
    %c0_18 = arith.constant 0 : index
    %22 = vector.load %arg8[%c0_17, %c0_18] : memref<128x128xf32, #tpu.memory_space<vmem>>, vector<128x128xf32>
    tpu.vector_store %arg8[%c0_17, %c0_18], %21 {strides = array<i32>} : memref<128x128xf32, #tpu.memory_space<vmem>>, vector<128x128xf32>,
    return
  }
  func.func @transform_0(%arg0: i32) -> (i32, i32) {
    %c0_i32 = arith.constant 0 : i32
    %c0_i32_0 = arith.constant 0 : i32
    return %arg0, %c0_i32 : i32, i32
  }
  func.func @transform_1(%arg0: i32) -> (i32, i32) {
    %c0_i32 = arith.constant 0 : i32
    %c0_i32_0 = arith.constant 0 : i32
    %c0_i32_1 = arith.constant 0 : i32
    return %c0_i32, %c0_i32_0 : i32, i32
  }
  func.func @transform_2(%arg0: i32) -> (i32, i32) {
    %c0_i32 = arith.constant 0 : i32
    %c0_i32_0 = arith.constant 0 : i32
    %c0_i32_1 = arith.constant 0 : i32
    return %c0_i32, %c0_i32_0 : i32, i32
  }
  func.func @transform_3(%arg0: i32) -> (i32, i32) {
    %c0_i32 = arith.constant 0 : i32
    %c0_i32_0 = arith.constant 0 : i32
    %c0_i32_1 = arith.constant 0 : i32
    return %c0_i32, %c0_i32_0 : i32, i32
  }
  func.func @transform_4(%arg0: i32) -> (i32, i32) {
    %c0_i32 = arith.constant 0 : i32
    %c0_i32_0 = arith.constant 0 : i32
    %c0_i32_1 = arith.constant 0 : i32
    return %c0_i32, %c0_i32_0 : i32, i32
  }
  func.func @transform_5(%arg0: i32) -> (i32, i32) {
    %c0_i32 = arith.constant 0 : i32
    %c0_i32_0 = arith.constant 0 : i32
    %c0_i32_1 = arith.constant 0 : i32
    return %c0_i32, %c0_i32_0 : i32, i32
  }
  func.func @transform_6(%arg0: i32) -> (i32, i32) {
    %c0_i32 = arith.constant 0 : i32
    %c0_i32_0 = arith.constant 0 : i32
    %c0_i32_1 = arith.constant 0 : i32
    return %c0_i32, %c0_i32_0 : i32, i32
  }
  func.func @transform_7(%arg0: i32) -> (i32, i32) {
    %c0_i32 = arith.constant 0 : i32
    %c0_i32_0 = arith.constant 0 : i32
    return %arg0, %c0_i32 : i32, i32
  }
}

</mosaic_0001>

<bundles_post_ra>
// kernel: _mimo_mlp_impl.2
= control target key start
LH: loop header
LB: loop body
LE: loop exit
PB: predicated region body
PF: predicated region fallthrough
CT: control target
= control target key end

     0   :  { %s2021_s0 = inlined_call_operand.vmem [shape: bf16[16,32], index: 0, kind: input, shape index: {}]   ;;  %s2022_s1 = inlined_call_operand.<no memory space> [shape: bf16[], index: 1, kind: input, shape index: {}]   ;;  %s2023_s2 = inlined_call_operand.vmem [shape: bf16[32,64], index: 2, kind: input, shape index: {}]   ;;  %s2024_s3 = inlined_call_operand.vmem [shape: bf16[64,64], index: 3, kind: input, shape index: {}]   ;;  %s2025_s4 = inlined_call_operand.vmem [shape: bf16[64,16], index: 4, kind: input, shape index: {}]   ;;  %s2026_s5 = inlined_call_operand.vmem [shape: f32[1,16], index: 5, kind: input, shape index: {}]   ;;  %s2027_s6 = inlined_call_operand.<no memory space> [shape: f32[], index: 6, kind: input, shape index: {}]   ;;  %s2028_s7 = inlined_call_operand.vmem [shape: f32[1,64], index: 7, kind: input, shape index: {}]   ;;  %s2029_s8 = inlined_call_operand.vmem [shape: f32[1,64], index: 8, kind: input, shape index: {}]   ;;  %s2030_s9 = inlined_call_operand.vmem [shape: f32[128,128], index: 9, kind: output, shape index: {}]  }
   0x1   :  { %v14_v0 = vstv %s2022_s1  ;;  %v1779_v1 = vstv %s2027_s6 }
   0x2   :  { %v1781_v2 = vunpack.i.l.bf16 %v14_v0 }
   0x3   :  { %v63_v3 = vlaneseq  ;;  %v158_v4 = vld [vmem:[%s2023_s2] sm:$0xff]   ;;  %v1373_v8 = vld [vmem:[%s2023_s2 + $0x8] sm:$0xff]   ;;  %v1722_v25 = vmov 0.0   ;;  %v1378_v34 = vld [vmem:[%s2024_s3 + $0x10] sm:$0xff]  }
   0x4   :  { %v1427_v5 = vpack.c.bf16 %v1781_v2, %v1781_v2  ;;  %v159_v6 = vunpack.c.l.bf16 %v158_v4  ;;  %v180_v7 = vunpack.c.h.bf16 %v158_v4  ;;  %v60_v9 = vld [vmem:[%s2021_s0] sm:$0xff]   ;;  %v202_v14 = vunpack.c.l.bf16 %v1373_v8  ;;  %v1376_v16 = vld [vmem:[%s2024_s3 + $0x8] sm:$0xff]   ;;  %v1380_v35 = vld [vmem:[%s2024_s3 + $0x18] sm:$0xff]  }
   0x5   :  { %v305_v10 = vld [vmem:[%s2024_s3] sm:$0xff]   ;;  %v1797_v11 = vand.u32 127, %v63_v3  ;;  %v1802_v13 = vshrl.u32 %v63_v3, 7  ;;  %v224_v15 = vunpack.c.h.bf16 %v1373_v8  ;;  %v61_v17 = vunpack.c.l.bf16 %v60_v9 }
   0x6   :  { %v283_v12 = vld [vmem:[%s2029_s8] sm:$0x1]  ;;  %1463 = vst [vmem:[#allocation38 + $0x10] sm:$0xff] %v1427_v5   ;;  %1428 = vst [vmem:[#allocation37 + $0x8] sm:$0xff] %v1427_v5   ;;  %v82_v18 = vunpack.c.h.bf16 %v60_v9  ;;  %v306_v19 = vunpack.c.l.bf16 %v305_v10  ;;  %v327_v20 = vunpack.c.h.bf16 %v305_v10  ;;  %v349_v24 = vunpack.c.l.bf16 %v1376_v16 }
   0x7   :  { %1433 = vst [vmem:[#allocation37 + $0x10] sm:$0xff] %v1427_v5   ;;  %1438 = vst [vmem:[#allocation37 + $0x18] sm:$0xff] %v1427_v5   ;;  %vm164_vm0 = vcmp.lt.s32.totalorder %v1797_v11, 64  ;;  %vm287_vm1 = vcmp.lt.s32.totalorder %v1802_v13, 1  ;;  %vm66_vm2 = vcmp.lt.s32.totalorder %v1797_v11, 32  ;;  %v371_v43 = vunpack.c.h.bf16 %v1376_v16 }
   0x8   :  { %1443 = vst [vmem:[#allocation37 + $0x20] sm:$0xff] %v1427_v5   ;;  %1448 = vst [vmem:[#allocation37 + $0x28] sm:$0xff] %v1427_v5   ;;  %v165_v21 = vsel %vm164_vm0, %v159_v6, %v1781_v2  ;;  %v186_v22 = vsel %vm164_vm0, %v180_v7, %v1781_v2  ;;  %v288_v23 = vsel %vm287_vm1, %v283_v12, %v1779_v1  ;;  %v393_v45 = vunpack.c.l.bf16 %v1378_v34 }
   0x9   :  { %1453 = vst [vmem:[#allocation37 + $0x30] sm:$0xff] %v1427_v5   ;;  %1458 = vst [vmem:[#allocation37 + $0x38] sm:$0xff] %v1427_v5   ;;  %v166_v26 = vpack.c.bf16 %v1722_v25, %v165_v21  ;;  %v188_v27 = vpack.c.bf16 %v1722_v25, %v186_v22  ;;  %v208_v28 = vsel %vm164_vm0, %v202_v14, %v1781_v2  ;;  %v415_v46 = vunpack.c.h.bf16 %v1378_v34 }
   0xa   :  { %1468 = vst [vmem:[#allocation38 + $0x18] sm:$0xff] %v1427_v5   ;;  %1473 = vst [vmem:[#allocation38 + $0x20] sm:$0xff] %v1427_v5   ;;  %v230_v29 = vsel %vm164_vm0, %v224_v15, %v1781_v2  ;;  %v210_v30 = vpack.c.bf16 %v1722_v25, %v208_v28  ;;  %v67_v32 = vsel %vm66_vm2, %v61_v17, %v1781_v2  ;;  %v437_v47 = vunpack.c.l.bf16 %v1380_v35  ;;  %v721_v28 = vld [vmem:[%s2026_s5] sm:$0x1] }
   0xb   :  { %1478 = vst [vmem:[#allocation38 + $0x28] sm:$0xff] %v1427_v5   ;;  %1483 = vst [vmem:[#allocation38 + $0x30] sm:$0xff] %v1427_v5   ;;  %v232_v31 = vpack.c.bf16 %v1722_v25, %v230_v29  ;;  %v88_v33 = vsel %vm66_vm2, %v82_v18, %v1781_v2  ;;  %v68_v36 = vpack.c.bf16 %v1722_v25, %v67_v32  ;;  %v459_v49 = vunpack.c.h.bf16 %v1380_v35  ;;  %v1383_v29 = vld [vmem:[%s2025_s4 + $0x8] sm:$0xff]   ;;  %v1385_v35 = vld [vmem:[%s2025_s4 + $0x10] sm:$0xff]  }
   0xc   :  { %1488 = vst [vmem:[#allocation38 + $0x38] sm:$0xff] %v1427_v5   ;;  %1493 = vst [vmem:[#allocation40 + $0x20] sm:$0xff] %v1427_v5   ;;  %v90_v37 = vpack.c.bf16 %v1722_v25, %v88_v33  ;;  %v312_v38 = vsel %vm164_vm0, %v306_v19, %v1781_v2  ;;  %v333_v39 = vsel %vm164_vm0, %v327_v20, %v1781_v2  ;;  %vm530_vm3 = vcmp.lt.s32.totalorder %v1797_v11, 16 }
   0xd   :  { %1498 = vst [vmem:[#allocation40 + $0x28] sm:$0xff] %v1427_v5   ;;  %1503 = vst [vmem:[#allocation40 + $0x30] sm:$0xff] %v1427_v5   ;;  %v313_v40 = vpack.c.bf16 %v1722_v25, %v312_v38  ;;  %v335_v41 = vpack.c.bf16 %v1722_v25, %v333_v39  ;;  %v355_v42 = vsel %vm164_vm0, %v349_v24, %v1781_v2  ;;  %v1692_v63 = vld [vmem:[#allocation38 + $0x10] sm:$0xff]   ;;  %v1699_v15 = vld [vmem:[#allocation37 + $0x8] sm:$0xff]   ;;  %v568_v34 = vunpack.c.l.bf16 %v1383_v29 }
   0xe   :  { %1508 = vst [vmem:[#allocation40 + $0x38] sm:$0xff] %v1427_v5   ;;  %1513 = vst [vmem:[#allocation42 + $0x20] sm:$0xff] %v1427_v5   ;;  %v357_v44 = vpack.c.bf16 %v1722_v25, %v355_v42  ;;  %v377_v48 = vsel %vm164_vm0, %v371_v43, %v1781_v2  ;;  %v293_v50 = vsel %vm164_vm0, %v288_v23, %v1779_v1  ;;  %v1700_v16 = vld [vmem:[#allocation37 + $0x10] sm:$0xff]   ;;  %v1701_v17 = vld [vmem:[#allocation37 + $0x18] sm:$0xff]   ;;  %v590_v38 = vunpack.c.h.bf16 %v1383_v29 }
   0xf   :  { %1518 = vst [vmem:[#allocation42 + $0x28] sm:$0xff] %v1427_v5   ;;  %1523 = vst [vmem:[#allocation42 + $0x30] sm:$0xff] %v1427_v5   ;;  %v379_v51 = vpack.c.bf16 %v1722_v25, %v377_v48  ;;  %v399_v52 = vsel %vm164_vm0, %v393_v45, %v1781_v2  ;;  %v421_v53 = vsel %vm164_vm0, %v415_v46, %v1781_v2  ;;  %v1702_v18 = vld [vmem:[#allocation37 + $0x20] sm:$0xff]   ;;  %v1703_v19 = vld [vmem:[#allocation37 + $0x28] sm:$0xff]   ;;  %v612_v39 = vunpack.c.l.bf16 %v1385_v35 }
  0x10   :  { %1528 = vst [vmem:[#allocation42 + $0x38] sm:$0xff] %v1427_v5   ;;  %168 = vst [vmem:[#allocation38] sm:$0xf] %v166_v26  ;;  %v443_v54 = vsel %vm164_vm0, %v437_v47, %v1781_v2  ;;  %v401_v55 = vpack.c.bf16 %v1722_v25, %v399_v52  ;;  %v423_v56 = vpack.c.bf16 %v1722_v25, %v421_v53  ;;  %v1704_v20 = vld [vmem:[#allocation37 + $0x30] sm:$0xff]   ;;  %v1705_v21 = vld [vmem:[#allocation37 + $0x38] sm:$0xff]  }
  0x11   :  { %190 = vst [vmem:[#allocation38 + $0x4] sm:$0xf] %v188_v27  ;;  %212 = vst [vmem:[#allocation38 + $0x8] sm:$0xf] %v210_v30  ;;  %v445_v57 = vpack.c.bf16 %v1722_v25, %v443_v54  ;;  %v465_v58 = vsel %vm164_vm0, %v459_v49, %v1781_v2  ;;  %v1693_v0 = vld [vmem:[#allocation38 + $0x18] sm:$0xff]   ;;  %v1694_v5 = vld [vmem:[#allocation38 + $0x20] sm:$0xff]   ;;  %v726_v33 = vsel %vm287_vm1, %v721_v28, %v1779_v1 }
  0x12   :  { %234 = vst [vmem:[#allocation38 + $0xc] sm:$0xf] %v232_v31  ;;  %70 = vst [vmem:[#allocation37] sm:$0xf] %v68_v36  ;;  %v467_v59 = vpack.c.bf16 %v1722_v25, %v465_v58  ;;  %v1695_v7 = vld [vmem:[#allocation38 + $0x28] sm:$0xff]   ;;  %v1696_v9 = vld [vmem:[#allocation38 + $0x30] sm:$0xff]   ;;  %v574_v42 = vsel %vm530_vm3, %v568_v34, %v1781_v2  ;;  %v596_v46 = vsel %vm530_vm3, %v590_v38, %v1781_v2 }
  0x13   :  { %92 = vst [vmem:[#allocation37 + $0x4] sm:$0xf] %v90_v37  ;;  %315 = vst [vmem:[#allocation40] sm:$0xf] %v313_v40  ;;  %v1710_v10 = vld [vmem:[#allocation40 + $0x20] sm:$0xff]   ;;  %v1697_v12 = vld [vmem:[#allocation38 + $0x38] sm:$0xff]   ;;  %v731_v37 = vsel %vm530_vm3, %v726_v33, %v1779_v1  ;;  %v634_v40 = vunpack.c.h.bf16 %v1385_v35  ;;  %v576_v45 = vpack.c.bf16 %v1722_v25, %v574_v42  ;;  %v598_v47 = vpack.c.bf16 %v1722_v25, %v596_v46 }
  0x14   :  { %337 = vst [vmem:[#allocation40 + $0x4] sm:$0xf] %v335_v41  ;;  %359 = vst [vmem:[#allocation40 + $0x8] sm:$0xf] %v357_v44  ;;  %v1711_v14 = vld [vmem:[#allocation40 + $0x28] sm:$0xff]   ;;  %v1712_v22 = vld [vmem:[#allocation40 + $0x30] sm:$0xff]   ;;  %v618_v48 = vsel %vm530_vm3, %v612_v39, %v1781_v2 }
  0x15   :  { %295 = vst [vmem:[#allocation39] sm:$0x1] %v293_v50  ;;  %381 = vst [vmem:[#allocation40 + $0xc] sm:$0xf] %v379_v51  ;;  %v1713_v23 = vld [vmem:[#allocation40 + $0x38] sm:$0xff]   ;;  %v1387_v36 = vld [vmem:[%s2025_s4 + $0x18] sm:$0xff]   ;;  %v640_v49 = vsel %vm530_vm3, %v634_v40, %v1781_v2  ;;  %v620_v51 = vpack.c.bf16 %v1722_v25, %v618_v48 }
  0x16   :  { %403 = vst [vmem:[#allocation40 + $0x10] sm:$0xf] %v401_v55  ;;  %425 = vst [vmem:[#allocation40 + $0x14] sm:$0xf] %v423_v56  ;;  %v502_v24 = vld [vmem:[%s2028_s7] sm:$0x1]  ;;  %v656_v43 = vunpack.c.l.bf16 %v1387_v36  ;;  %v642_v52 = vpack.c.bf16 %v1722_v25, %v640_v49  ;;  %v678_v54 = vunpack.c.h.bf16 %v1387_v36 }
  0x17   :  { %447 = vst [vmem:[#allocation40 + $0x18] sm:$0xf] %v445_v57  ;;  %469 = vst [vmem:[#allocation40 + $0x1c] sm:$0xf] %v467_v59  ;;  %v507_v26 = vsel %vm287_vm1, %v502_v24, %v1779_v1  ;;  %v524_v27 = vld [vmem:[%s2025_s4] sm:$0xff]  }
  0x18   :  { %v1690_v60 = vld [vmem:[#allocation38] sm:$0xff]   ;;  %v512_v30 = vsel %vm164_vm0, %v507_v26, %v1779_v1  ;;  %v525_v31 = vunpack.c.l.bf16 %v524_v27  ;;  %v546_v32 = vunpack.c.h.bf16 %v524_v27  ;;  %733 = vst [vmem:[#allocation43] sm:$0x1] %v731_v37  ;;  %v662_v50 = vsel %vm530_vm3, %v656_v43, %v1781_v2  ;;  %578 = vst [vmem:[#allocation42 + $0x8] sm:$0xf] %v576_v45 }
  0x19   :  { %v1691_v61 = vld [vmem:[#allocation38 + $0x8] sm:$0xff]   ;;  %1577 = vmatprep.subr.bf16.mxu0 %v1690_v60  ;;  %514 = vst [vmem:[#allocation41] sm:$0x1] %v512_v30  ;;  %v664_v53 = vpack.c.bf16 %v1722_v25, %v662_v50  ;;  %600 = vst [vmem:[#allocation42 + $0xc] sm:$0xf] %v598_v47  ;;  %v684_v55 = vsel %vm530_vm3, %v678_v54, %v1781_v2 }
  0x1a   :  { %v1698_v62 = vld [vmem:[#allocation37] sm:$0xff]   ;;  %1578 = vmatpush3.bf16.msra.mxu0 %v1690_v60  ;;  %v531_v13 = vsel %vm530_vm3, %v525_v31, %v1781_v2  ;;  %v552_v41 = vsel %vm530_vm3, %v546_v32, %v1781_v2  ;;  %622 = vst [vmem:[#allocation42 + $0x10] sm:$0xf] %v620_v51  ;;  %644 = vst [vmem:[#allocation42 + $0x14] sm:$0xf] %v642_v52  ;;  %v686_v56 = vpack.c.bf16 %v1722_v25, %v684_v55  ;;  %v1944_v2 = vld [vmem:[#allocation42 + $0x28] sm:$0xff]  }
  0x1b   :  { %1579 = vmatprep.subr.bf16.mxu0 %v1691_v61  ;;  %1593 = vmatprep.mubr.bf16.mxu0 %v1698_v62  ;;  %v1706_v3 = vld [vmem:[#allocation40] sm:$0xff]   ;;  %v532_v44 = vpack.c.bf16 %v1722_v25, %v531_v13  ;;  %v554_v1 = vpack.c.bf16 %v1722_v25, %v552_v41  ;;  %666 = vst [vmem:[#allocation42 + $0x18] sm:$0xf] %v664_v53 }
  0x1c   :  { %v1707_v4 = vld [vmem:[#allocation40 + $0x8] sm:$0xff]   ;;  %1609 = vmatprep.subr.bf16.mxu1 %v1706_v3  ;;  %688 = vst [vmem:[#allocation42 + $0x1c] sm:$0xf] %v686_v56  ;;  %v1949_v11 = vld [vmem:[#allocation39] ss:$0 sm:$0xff]  ;;  %v1720_v56 = vld [vmem:[#allocation42 + $0x30] sm:$0xff]  }
  0x1d   :  { %1610 = vmatpush3.bf16.msra.mxu1 %v1706_v3  ;;  %v1708_v6 = vld [vmem:[#allocation40 + $0x10] sm:$0xff]   ;;  %534 = vst [vmem:[#allocation42] sm:$0xf] %v532_v44  ;;  %556 = vst [vmem:[#allocation42 + $0x4] sm:$0xf] %v554_v1 }
  0x1e   :  { %1580 = vmatpush3.bf16.msra.mxu0 %v1691_v61  ;;  %1611 = vmatprep.subr.bf16.mxu1 %v1707_v4  ;;  %v1709_v8 = vld [vmem:[#allocation40 + $0x18] sm:$0xff]   ;;  %v1940_v61 = vld [vmem:[#allocation42 + $0x20] sm:$0xff]  }
  0x1f   :  { %1581 = vmatprep.subr.bf16.mxu0 %v1692_v63 }
  0x20   :  { %v1715_v58 = vld [vmem:[#allocation42 + $0x8] sm:$0xff]  }
  0x21   :  { %1612 = vmatpush3.bf16.msra.mxu1 %v1707_v4  ;;  %v1716_v59 = vld [vmem:[#allocation42 + $0x10] sm:$0xff]  }
  0x22   :  { %1582 = vmatpush3.bf16.msra.mxu0 %v1692_v63  ;;  %1613 = vmatprep.subr.bf16.mxu1 %v1708_v6 }
  0x23   :  { %1583 = vmatprep.subr.bf16.mxu0 %v1693_v0  ;;  %v1937_v60 = vld [vmem:[#allocation42 + $0x18] sm:$0xff]  }
  0x24   :  { %v1714_v57 = vld [vmem:[#allocation42] sm:$0xff]  }
  0x25   :  { %1614 = vmatpush3.bf16.msra.mxu1 %v1708_v6 }
  0x26   :  { %1584 = vmatpush3.bf16.msra.mxu0 %v1693_v0  ;;  %1615 = vmatprep.subr.bf16.mxu1 %v1709_v8 }
  0x27   :  { %1585 = vmatprep.subr.bf16.mxu0 %v1694_v5 }
  0x29   :  { %1616 = vmatpush3.bf16.msra.mxu1 %v1709_v8 }
  0x2a   :  { %1586 = vmatpush3.bf16.msra.mxu0 %v1694_v5  ;;  %1617 = vmatprep.subr.bf16.mxu1 %v1710_v10 }
  0x2b   :  { %1587 = vmatprep.subr.bf16.mxu0 %v1695_v7 }
  0x2d   :  { %1618 = vmatpush3.bf16.msra.mxu1 %v1710_v10 }
  0x2e   :  { %1588 = vmatpush3.bf16.msra.mxu0 %v1695_v7  ;;  %1619 = vmatprep.subr.bf16.mxu1 %v1711_v14 }
  0x2f   :  { %1589 = vmatprep.subr.bf16.mxu0 %v1696_v9 }
  0x31   :  { %1620 = vmatpush3.bf16.msra.mxu1 %v1711_v14 }
  0x32   :  { %1590 = vmatpush3.bf16.msra.mxu0 %v1696_v9  ;;  %1621 = vmatprep.subr.bf16.mxu1 %v1712_v22 }
  0x33   :  { %1591 = vmatprep.subr.bf16.mxu0 %v1697_v12 }
  0x35   :  { %1622 = vmatpush3.bf16.msra.mxu1 %v1712_v22 }
  0x36   :  { %1592 = vmatpush3.bf16.msra.mxu0 %v1697_v12  ;;  %1623 = vmatprep.subr.bf16.mxu1 %v1713_v23 }
  0x37   :  { %1641 = vmatprep.subr.bf16.mxu0 %v1714_v57 }
  0x39   :  { %1594 = vmatmul.mubr.bf16.vlgmr.msra.gmra.mrb[0].mxu0 %v1699_v15  ;;  %1624 = vmatpush3.bf16.msra.mxu1 %v1713_v23 }
  0x3a   :  { %1597 = vmatprep.mubr.bf16.mxu0 %v1700_v16  ;;  %1673 = vmatprep.subr.bf16.mxu1 %v1714_v57 }
  0x3b   :  { %1642 = vmatpush3.bf16.msra.mxu0 %v1714_v57 }
  0x3c   :  { %1643 = vmatprep.subr.bf16.mxu0 %v1715_v58 }
  0x3f   :  { %1644 = vmatpush3.bf16.msra.mxu0 %v1715_v58 }
  0x40   :  { %1645 = vmatprep.subr.bf16.mxu0 %v1716_v59 }
  0x41   :  { %1598 = vmatmul.mubr.bf16.gmra.mrb[4].mxu0 %v1701_v17 }
  0x42   :  { %1601 = vmatprep.mubr.bf16.mxu0 %v1702_v18 }
  0x43   :  { %1646 = vmatpush3.bf16.msra.mxu0 %v1716_v59 }
  0x44   :  { %1647 = vmatprep.subr.bf16.mxu0 %v1937_v60 }
  0x47   :  { %1648 = vmatpush3.bf16.msra.mxu0 %v1937_v60 }
  0x48   :  { %1649 = vmatprep.subr.bf16.mxu0 %v1940_v61 }
  0x49   :  { %1602 = vmatmul.mubr.bf16.gmra.mrb[8].mxu0 %v1703_v19 }
  0x4a   :  { %1605 = vmatprep.mubr.bf16.mxu0 %v1704_v20 }
  0x4b   :  { %1650 = vmatpush3.bf16.msra.mxu0 %v1940_v61 }
  0x4c   :  { %1651 = vmatprep.subr.bf16.mxu0 %v1944_v2 }
  0x4f   :  { %1652 = vmatpush3.bf16.msra.mxu0 %v1944_v2 }
  0x50   :  { %1653 = vmatprep.subr.bf16.mxu0 %v1720_v56 }
  0x51   :  { %1606 = vmatmul.mubr.bf16.gmra.mrb[12].mxu0 %v1705_v21 }
  0x53   :  { %1654 = vmatpush3.bf16.msra.mxu0 %v1720_v56 }
 0x10c   :  { %v1595_v25 = vpop.f32.mrb[0].mxu0 }
 0x10d   :  { %v913_v62 = vadd.f32 %v1595_v25, %v1949_v11  ;;  %v904_v63 = vpop.f32.mrb[1].mxu0 }
 0x10e   :  { %v905_v0 = vadd.f32 %v1949_v11, %v904_v63  ;;  %v1596_v3 = vpop.f32.mrb[2].mxu0 }
 0x10f   :  { %v916_v4 = vadd.f32 %v1596_v3, %v1949_v11  ;;  %v907_v5 = vpop.f32.mrb[3].mxu0  ;;  %v969_v7 = vmax.f32 %v913_v62, 0.0 }
 0x110   :  { %v908_v6 = vadd.f32 %v1949_v11, %v907_v5  ;;  %v967_v9 = vmax.f32 %v905_v0, 0.0 }
 0x111   :  { %v970_v8 = vmax.f32 %v916_v4, 0.0 }
 0x112   :  { %v968_v10 = vmax.f32 %v908_v6, 0.0 }
 0x113   :  { %v984_v12 = vpack.c.bf16 %v970_v8, %v969_v7 }
 0x114   :  { %v1599_v14 = vpop.f32.mrb[4].mxu0  ;;  %v983_v15 = vpack.c.bf16 %v968_v10, %v967_v9 }
 0x115   :  { %v929_v16 = vadd.f32 %v1599_v14, %v1949_v11  ;;  %v920_v17 = vpop.f32.mrb[5].mxu0 }
 0x116   :  { %v921_v18 = vadd.f32 %v1949_v11, %v920_v17  ;;  %v1600_v19 = vpop.f32.mrb[6].mxu0  ;;  %1625 = vmatprep.mubr.bf16.mxu1 %v983_v15 }
 0x117   :  { %v932_v20 = vadd.f32 %v1600_v19, %v1949_v11  ;;  %v923_v21 = vpop.f32.mrb[7].mxu0  ;;  %1626 = vmatmul.mubr.bf16.vlgmr.msra.gmra.mrb[0].mxu1 %v984_v12  ;;  %v973_v23 = vmax.f32 %v929_v16, 0.0 }
 0x118   :  { %v924_v22 = vadd.f32 %v1949_v11, %v923_v21  ;;  %1681 = vmatpush3.bf16.msra.mxu1 %v1714_v57  ;;  %v971_v26 = vmax.f32 %v921_v18, 0.0  ;;  %v1721_v57 = vld [vmem:[#allocation42 + $0x38] sm:$0xff]  }
 0x119   :  { %v974_v24 = vmax.f32 %v932_v20, 0.0  ;;  %1674 = vmatprep.subr.bf16.mxu1 %v1715_v58  ;;  %1655 = vmatprep.subr.bf16.mxu0 %v1721_v57 }
 0x11a   :  { %v972_v27 = vmax.f32 %v924_v22, 0.0  ;;  %1656 = vmatpush3.bf16.msra.mxu0 %v1721_v57 }
 0x11b   :  { %v986_v28 = vpack.c.bf16 %v974_v24, %v973_v23 }
 0x11c   :  { %v985_v29 = vpack.c.bf16 %v972_v27, %v971_v26  ;;  %v1603_v30 = vpop.f32.mrb[8].mxu0  ;;  %1682 = vmatpush3.bf16.msra.mxu1 %v1715_v58  ;;  %v1406_v58 = vld [vmem:[#allocation41] ss:$0 sm:$0xff] }
 0x11d   :  { %v945_v31 = vadd.f32 %v1603_v30, %v1949_v11  ;;  %v936_v32 = vpop.f32.mrb[9].mxu0  ;;  %1675 = vmatprep.subr.bf16.mxu1 %v1716_v59 }
 0x11e   :  { %v937_v33 = vadd.f32 %v1949_v11, %v936_v32  ;;  %v1604_v34 = vpop.f32.mrb[10].mxu0  ;;  %1629 = vmatprep.mubr.bf16.mxu1 %v985_v29 }
 0x11f   :  { %v948_v35 = vadd.f32 %v1604_v34, %v1949_v11  ;;  %v939_v36 = vpop.f32.mrb[11].mxu0  ;;  %1630 = vmatmul.mubr.bf16.gmra.mrb[4].mxu1 %v986_v28  ;;  %v977_v38 = vmax.f32 %v945_v31, 0.0 }
 0x120   :  { %v940_v37 = vadd.f32 %v1949_v11, %v939_v36  ;;  %1683 = vmatpush3.bf16.msra.mxu1 %v1716_v59  ;;  %v975_v40 = vmax.f32 %v937_v33, 0.0 }
 0x121   :  { %v978_v39 = vmax.f32 %v948_v35, 0.0  ;;  %1676 = vmatprep.subr.bf16.mxu1 %v1937_v60 }
 0x122   :  { %v976_v13 = vmax.f32 %v940_v37, 0.0 }
 0x123   :  { %v988_v41 = vpack.c.bf16 %v978_v39, %v977_v38 }
 0x124   :  { %v987_v42 = vpack.c.bf16 %v976_v13, %v975_v40  ;;  %v1607_v43 = vpop.f32.mrb[12].mxu0  ;;  %1684 = vmatpush3.bf16.msra.mxu1 %v1937_v60 }
 0x125   :  { %v961_v44 = vadd.f32 %v1607_v43, %v1949_v11  ;;  %v952_v1 = vpop.f32.mrb[13].mxu0  ;;  %1677 = vmatprep.subr.bf16.mxu1 %v1940_v61 }
 0x126   :  { %v953_v45 = vadd.f32 %v1949_v11, %v952_v1  ;;  %v1608_v46 = vpop.f32.mrb[14].mxu0  ;;  %1633 = vmatprep.mubr.bf16.mxu1 %v987_v42 }
 0x127   :  { %v964_v47 = vadd.f32 %v1608_v46, %v1949_v11  ;;  %v955_v48 = vpop.f32.mrb[15].mxu0  ;;  %1634 = vmatmul.mubr.bf16.gmra.mrb[8].mxu1 %v988_v41  ;;  %v981_v50 = vmax.f32 %v961_v44, 0.0 }
 0x128   :  { %v956_v49 = vadd.f32 %v1949_v11, %v955_v48  ;;  %1685 = vmatpush3.bf16.msra.mxu1 %v1940_v61  ;;  %v979_v52 = vmax.f32 %v953_v45, 0.0 }
 0x129   :  { %v982_v51 = vmax.f32 %v964_v47, 0.0  ;;  %1678 = vmatprep.subr.bf16.mxu1 %v1944_v2 }
 0x12a   :  { %v980_v53 = vmax.f32 %v956_v49, 0.0 }
 0x12b   :  { %v990_v54 = vpack.c.bf16 %v982_v51, %v981_v50  ;;  %v1415_v51 = vld [vmem:[#allocation43] ss:$0 sm:$0xff] }
 0x12c   :  { %v989_v55 = vpack.c.bf16 %v980_v53, %v979_v52  ;;  %1686 = vmatpush3.bf16.msra.mxu1 %v1944_v2 }
 0x12d   :  { %1679 = vmatprep.subr.bf16.mxu1 %v1720_v56 }
 0x12e   :  { %1637 = vmatprep.mubr.bf16.mxu1 %v989_v55 }
 0x12f   :  { %1638 = vmatmul.mubr.bf16.gmra.mrb[12].mxu1 %v990_v54 }
 0x130   :  { %1687 = vmatpush3.bf16.msra.mxu1 %v1720_v56 }
 0x131   :  { %1680 = vmatprep.subr.bf16.mxu1 %v1721_v57 }
 0x134   :  { %1688 = vmatpush3.bf16.msra.mxu1 %v1721_v57 }
 0x1ea   :  { %v1627_v59 = vpop.f32.mrb[0].mxu1 }
 0x1eb   :  { %v1105_v60 = vadd.f32 %v1627_v59, %v1406_v58  ;;  %v1096_v61 = vpop.f32.mrb[1].mxu1 }
 0x1ec   :  { %v1097_v11 = vadd.f32 %v1406_v58, %v1096_v61  ;;  %v1628_v25 = vpop.f32.mrb[2].mxu1 }
 0x1ed   :  { %v1108_v62 = vadd.f32 %v1628_v25, %v1406_v58  ;;  %v1099_v2 = vpop.f32.mrb[3].mxu1  ;;  %v1161_v0 = vmax.f32 %v1105_v60, 0.0 }
 0x1ee   :  { %v1100_v63 = vadd.f32 %v1406_v58, %v1099_v2  ;;  %v1159_v4 = vmax.f32 %v1097_v11, 0.0 }
 0x1ef   :  { %v1162_v3 = vmax.f32 %v1108_v62, 0.0 }
 0x1f0   :  { %v1160_v5 = vmax.f32 %v1100_v63, 0.0 }
 0x1f1   :  { %v1176_v6 = vpack.c.bf16 %v1162_v3, %v1161_v0 }
 0x1f2   :  { %v1175_v7 = vpack.c.bf16 %v1160_v5, %v1159_v4  ;;  %v1631_v8 = vpop.f32.mrb[4].mxu1 }
 0x1f3   :  { %v1121_v9 = vadd.f32 %v1631_v8, %v1406_v58  ;;  %v1112_v10 = vpop.f32.mrb[5].mxu1 }
 0x1f4   :  { %v1113_v12 = vadd.f32 %v1406_v58, %v1112_v10  ;;  %v1632_v14 = vpop.f32.mrb[6].mxu1  ;;  %1657 = vmatprep.mubr.bf16.mxu0 %v1175_v7 }
 0x1f5   :  { %v1124_v15 = vadd.f32 %v1632_v14, %v1406_v58  ;;  %v1115_v16 = vpop.f32.mrb[7].mxu1  ;;  %1658 = vmatmul.mubr.bf16.vlgmr.msra.gmra.mrb[16].mxu0 %v1176_v6  ;;  %v1165_v18 = vmax.f32 %v1121_v9, 0.0 }
 0x1f6   :  { %v1116_v17 = vadd.f32 %v1406_v58, %v1115_v16  ;;  %v1163_v20 = vmax.f32 %v1113_v12, 0.0 }
 0x1f7   :  { %v1166_v19 = vmax.f32 %v1124_v15, 0.0 }
 0x1f8   :  { %v1164_v21 = vmax.f32 %v1116_v17, 0.0 }
 0x1f9   :  { %v1178_v22 = vpack.c.bf16 %v1166_v19, %v1165_v18 }
 0x1fa   :  { %v1177_v23 = vpack.c.bf16 %v1164_v21, %v1163_v20  ;;  %v1635_v24 = vpop.f32.mrb[8].mxu1 }
 0x1fb   :  { %v1137_v26 = vadd.f32 %v1635_v24, %v1406_v58  ;;  %v1128_v27 = vpop.f32.mrb[9].mxu1 }
 0x1fc   :  { %v1129_v28 = vadd.f32 %v1406_v58, %v1128_v27  ;;  %v1636_v29 = vpop.f32.mrb[10].mxu1  ;;  %1661 = vmatprep.mubr.bf16.mxu0 %v1177_v23 }
 0x1fd   :  { %v1140_v30 = vadd.f32 %v1636_v29, %v1406_v58  ;;  %v1131_v31 = vpop.f32.mrb[11].mxu1  ;;  %1662 = vmatmul.mubr.bf16.gmra.mrb[20].mxu0 %v1178_v22  ;;  %v1169_v33 = vmax.f32 %v1137_v26, 0.0 }
 0x1fe   :  { %v1132_v32 = vadd.f32 %v1406_v58, %v1131_v31  ;;  %v1167_v35 = vmax.f32 %v1129_v28, 0.0 }
 0x1ff   :  { %v1170_v34 = vmax.f32 %v1140_v30, 0.0 }
 0x200   :  { %v1168_v36 = vmax.f32 %v1132_v32, 0.0 }
 0x201   :  { %v1180_v37 = vpack.c.bf16 %v1170_v34, %v1169_v33 }
 0x202   :  { %v1179_v38 = vpack.c.bf16 %v1168_v36, %v1167_v35  ;;  %v1639_v39 = vpop.f32.mrb[12].mxu1 }
 0x203   :  { %v1153_v40 = vadd.f32 %v1639_v39, %v1406_v58  ;;  %v1144_v13 = vpop.f32.mrb[13].mxu1 }
 0x204   :  { %v1145_v41 = vadd.f32 %v1406_v58, %v1144_v13  ;;  %v1640_v42 = vpop.f32.mrb[14].mxu1  ;;  %1665 = vmatprep.mubr.bf16.mxu1 %v1179_v38 }
 0x205   :  { %v1156_v43 = vadd.f32 %v1640_v42, %v1406_v58  ;;  %v1147_v44 = vpop.f32.mrb[15].mxu1  ;;  %1666 = vmatmul.mubr.bf16.vlgmr.msra.gmra.mrb[16].mxu1 %v1180_v37  ;;  %v1173_v45 = vmax.f32 %v1153_v40, 0.0 }
 0x206   :  { %v1148_v1 = vadd.f32 %v1406_v58, %v1147_v44  ;;  %v1171_v47 = vmax.f32 %v1145_v41, 0.0 }
 0x207   :  { %v1174_v46 = vmax.f32 %v1156_v43, 0.0 }
 0x208   :  { %v1172_v48 = vmax.f32 %v1148_v1, 0.0 }
 0x209   :  { %v1182_v49 = vpack.c.bf16 %v1174_v46, %v1173_v45 }
 0x20a   :  { %v1181_v50 = vpack.c.bf16 %v1172_v48, %v1171_v47 }
 0x20c   :  { %1669 = vmatprep.mubr.bf16.mxu1 %v1181_v50 }
 0x20d   :  { %1670 = vmatmul.mubr.bf16.gmra.mrb[20].mxu1 %v1182_v49 }
 0x2c8   :  { %v1659_v52 = vpop.f32.mrb[16].mxu0 }
 0x2c9   :  { %v1297_v53 = vadd.f32 %v1659_v52, %v1415_v51  ;;  %v1288_v54 = vpop.f32.mrb[17].mxu0 }
 0x2ca   :  { %v1289_v55 = vadd.f32 %v1415_v51, %v1288_v54  ;;  %v1660_v56 = vpop.f32.mrb[18].mxu0 }
 0x2cb   :  { %1353 = vst [vmem:[%s2030_s9 + $0x10] sm:$0xff] %v1297_v53  ;;  %v1300_v57 = vadd.f32 %v1660_v56, %v1415_v51  ;;  %v1291_v58 = vpop.f32.mrb[19].mxu0 }
 0x2cc   :  { %1351 = vst [vmem:[%s2030_s9] sm:$0xff] %v1289_v55  ;;  %v1292_v59 = vadd.f32 %v1415_v51, %v1291_v58 }
 0x2cd   :  { %1354 = vst [vmem:[%s2030_s9 + $0x18] sm:$0xff] %v1300_v57 }
 0x2ce   :  { %1352 = vst [vmem:[%s2030_s9 + $0x8] sm:$0xff] %v1292_v59 }
 0x2d0   :  { %v1663_v60 = vpop.f32.mrb[20].mxu0 }
 0x2d1   :  { %v1313_v61 = vadd.f32 %v1663_v60, %v1415_v51  ;;  %v1304_v11 = vpop.f32.mrb[21].mxu0 }
 0x2d2   :  { %v1305_v25 = vadd.f32 %v1415_v51, %v1304_v11  ;;  %v1664_v62 = vpop.f32.mrb[22].mxu0 }
 0x2d3   :  { %1357 = vst [vmem:[%s2030_s9 + $0x30] sm:$0xff] %v1313_v61  ;;  %v1316_v2 = vadd.f32 %v1664_v62, %v1415_v51  ;;  %v1307_v63 = vpop.f32.mrb[23].mxu0 }
 0x2d4   :  { %1355 = vst [vmem:[%s2030_s9 + $0x20] sm:$0xff] %v1305_v25  ;;  %v1308_v0 = vadd.f32 %v1415_v51, %v1307_v63 }
 0x2d5   :  { %1358 = vst [vmem:[%s2030_s9 + $0x38] sm:$0xff] %v1316_v2 }
 0x2d6   :  { %1356 = vst [vmem:[%s2030_s9 + $0x28] sm:$0xff] %v1308_v0 }
 0x2d8   :  { %v1667_v3 = vpop.f32.mrb[16].mxu1 }
 0x2d9   :  { %v1329_v4 = vadd.f32 %v1667_v3, %v1415_v51  ;;  %v1320_v5 = vpop.f32.mrb[17].mxu1 }
 0x2da   :  { %v1321_v6 = vadd.f32 %v1415_v51, %v1320_v5  ;;  %v1668_v7 = vpop.f32.mrb[18].mxu1 }
 0x2db   :  { %1361 = vst [vmem:[%s2030_s9 + $0x50] sm:$0xff] %v1329_v4  ;;  %v1332_v8 = vadd.f32 %v1668_v7, %v1415_v51  ;;  %v1323_v9 = vpop.f32.mrb[19].mxu1 }
 0x2dc   :  { %1359 = vst [vmem:[%s2030_s9 + $0x40] sm:$0xff] %v1321_v6  ;;  %v1324_v10 = vadd.f32 %v1415_v51, %v1323_v9 }
 0x2dd   :  { %1362 = vst [vmem:[%s2030_s9 + $0x58] sm:$0xff] %v1332_v8 }
 0x2de   :  { %1360 = vst [vmem:[%s2030_s9 + $0x48] sm:$0xff] %v1324_v10 }
 0x2e0   :  { %v1671_v12 = vpop.f32.mrb[20].mxu1 }
 0x2e1   :  { %v1345_v14 = vadd.f32 %v1671_v12, %v1415_v51  ;;  %v1336_v15 = vpop.f32.mrb[21].mxu1 }
 0x2e2   :  { %v1337_v16 = vadd.f32 %v1415_v51, %v1336_v15  ;;  %v1672_v17 = vpop.f32.mrb[22].mxu1 }
 0x2e3   :  { %1365 = vst [vmem:[%s2030_s9 + $0x70] sm:$0xff] %v1345_v14  ;;  %v1348_v18 = vadd.f32 %v1672_v17, %v1415_v51  ;;  %v1339_v19 = vpop.f32.mrb[23].mxu1 }
 0x2e4   :  { %1363 = vst [vmem:[%s2030_s9 + $0x60] sm:$0xff] %v1337_v16  ;;  %v1340_v20 = vadd.f32 %v1415_v51, %v1339_v19 }
 0x2e5   :  { %1366 = vst [vmem:[%s2030_s9 + $0x78] sm:$0xff] %v1348_v18 }
 0x2e6   :  { %1364 = vst [vmem:[%s2030_s9 + $0x68] sm:$0xff] %v1340_v20 }

// kernel: _mimo_mlp_impl.2
= control target key start
LH: loop header
LB: loop body
LE: loop exit
PB: predicated region body
PF: predicated region fallthrough
CT: control target
= control target key end

     0   :  { %s2021_s0 = inlined_call_operand.vmem [shape: bf16[16,32], index: 0, kind: input, shape index: {}]   ;;  %s2022_s1 = inlined_call_operand.<no memory space> [shape: bf16[], index: 1, kind: input, shape index: {}]   ;;  %s2023_s2 = inlined_call_operand.vmem [shape: bf16[32,64], index: 2, kind: input, shape index: {}]   ;;  %s2024_s3 = inlined_call_operand.vmem [shape: bf16[64,64], index: 3, kind: input, shape index: {}]   ;;  %s2025_s4 = inlined_call_operand.vmem [shape: bf16[64,16], index: 4, kind: input, shape index: {}]   ;;  %s2026_s5 = inlined_call_operand.vmem [shape: f32[1,16], index: 5, kind: input, shape index: {}]   ;;  %s2027_s6 = inlined_call_operand.<no memory space> [shape: f32[], index: 6, kind: input, shape index: {}]   ;;  %s2028_s7 = inlined_call_operand.vmem [shape: f32[1,64], index: 7, kind: input, shape index: {}]   ;;  %s2029_s8 = inlined_call_operand.vmem [shape: f32[1,64], index: 8, kind: input, shape index: {}]   ;;  %s2030_s9 = inlined_call_operand.vmem [shape: f32[128,128], index: 9, kind: output, shape index: {}]  }
   0x1   :  { %v14_v0 = vstv %s2022_s1  ;;  %v1779_v1 = vstv %s2027_s6 }
   0x2   :  { %v1781_v2 = vunpack.i.l.bf16 %v14_v0 }
   0x3   :  { %v63_v3 = vlaneseq  ;;  %v158_v4 = vld [vmem:[%s2023_s2] sm:$0xff]   ;;  %v1373_v8 = vld [vmem:[%s2023_s2 + $0x8] sm:$0xff]   ;;  %v1722_v25 = vmov 0.0   ;;  %v1378_v34 = vld [vmem:[%s2024_s3 + $0x10] sm:$0xff]  }
   0x4   :  { %v1427_v5 = vpack.c.bf16 %v1781_v2, %v1781_v2  ;;  %v159_v6 = vunpack.c.l.bf16 %v158_v4  ;;  %v180_v7 = vunpack.c.h.bf16 %v158_v4  ;;  %v60_v9 = vld [vmem:[%s2021_s0] sm:$0xff]   ;;  %v202_v14 = vunpack.c.l.bf16 %v1373_v8  ;;  %v1376_v16 = vld [vmem:[%s2024_s3 + $0x8] sm:$0xff]   ;;  %v1380_v35 = vld [vmem:[%s2024_s3 + $0x18] sm:$0xff]  }
   0x5   :  { %v305_v10 = vld [vmem:[%s2024_s3] sm:$0xff]   ;;  %v1797_v11 = vand.u32 127, %v63_v3  ;;  %v1802_v13 = vshrl.u32 %v63_v3, 7  ;;  %v224_v15 = vunpack.c.h.bf16 %v1373_v8  ;;  %v61_v17 = vunpack.c.l.bf16 %v60_v9 }
   0x6   :  { %v283_v12 = vld [vmem:[%s2029_s8] sm:$0x1]  ;;  %1463 = vst [vmem:[#allocation38 + $0x10] sm:$0xff] %v1427_v5   ;;  %1428 = vst [vmem:[#allocation37 + $0x8] sm:$0xff] %v1427_v5   ;;  %v82_v18 = vunpack.c.h.bf16 %v60_v9  ;;  %v306_v19 = vunpack.c.l.bf16 %v305_v10  ;;  %v327_v20 = vunpack.c.h.bf16 %v305_v10  ;;  %v349_v24 = vunpack.c.l.bf16 %v1376_v16 }
   0x7   :  { %1433 = vst [vmem:[#allocation37 + $0x10] sm:$0xff] %v1427_v5   ;;  %1438 = vst [vmem:[#allocation37 + $0x18] sm:$0xff] %v1427_v5   ;;  %vm164_vm0 = vcmp.lt.s32.totalorder %v1797_v11, 64  ;;  %vm287_vm1 = vcmp.lt.s32.totalorder %v1802_v13, 1  ;;  %vm66_vm2 = vcmp.lt.s32.totalorder %v1797_v11, 32  ;;  %v371_v43 = vunpack.c.h.bf16 %v1376_v16 }
   0x8   :  { %1443 = vst [vmem:[#allocation37 + $0x20] sm:$0xff] %v1427_v5   ;;  %1448 = vst [vmem:[#allocation37 + $0x28] sm:$0xff] %v1427_v5   ;;  %v165_v21 = vsel %vm164_vm0, %v159_v6, %v1781_v2  ;;  %v186_v22 = vsel %vm164_vm0, %v180_v7, %v1781_v2  ;;  %v288_v23 = vsel %vm287_vm1, %v283_v12, %v1779_v1  ;;  %v393_v45 = vunpack.c.l.bf16 %v1378_v34 }
   0x9   :  { %1453 = vst [vmem:[#allocation37 + $0x30] sm:$0xff] %v1427_v5   ;;  %1458 = vst [vmem:[#allocation37 + $0x38] sm:$0xff] %v1427_v5   ;;  %v166_v26 = vpack.c.bf16 %v1722_v25, %v165_v21  ;;  %v188_v27 = vpack.c.bf16 %v1722_v25, %v186_v22  ;;  %v208_v28 = vsel %vm164_vm0, %v202_v14, %v1781_v2  ;;  %v415_v46 = vunpack.c.h.bf16 %v1378_v34 }
   0xa   :  { %1468 = vst [vmem:[#allocation38 + $0x18] sm:$0xff] %v1427_v5   ;;  %1473 = vst [vmem:[#allocation38 + $0x20] sm:$0xff] %v1427_v5   ;;  %v230_v29 = vsel %vm164_vm0, %v224_v15, %v1781_v2  ;;  %v210_v30 = vpack.c.bf16 %v1722_v25, %v208_v28  ;;  %v67_v32 = vsel %vm66_vm2, %v61_v17, %v1781_v2  ;;  %v437_v47 = vunpack.c.l.bf16 %v1380_v35  ;;  %v721_v28 = vld [vmem:[%s2026_s5] sm:$0x1] }
   0xb   :  { %1478 = vst [vmem:[#allocation38 + $0x28] sm:$0xff] %v1427_v5   ;;  %1483 = vst [vmem:[#allocation38 + $0x30] sm:$0xff] %v1427_v5   ;;  %v232_v31 = vpack.c.bf16 %v1722_v25, %v230_v29  ;;  %v88_v33 = vsel %vm66_vm2, %v82_v18, %v1781_v2  ;;  %v68_v36 = vpack.c.bf16 %v1722_v25, %v67_v32  ;;  %v459_v49 = vunpack.c.h.bf16 %v1380_v35  ;;  %v1383_v29 = vld [vmem:[%s2025_s4 + $0x8] sm:$0xff]   ;;  %v1385_v35 = vld [vmem:[%s2025_s4 + $0x10] sm:$0xff]  }
   0xc   :  { %1488 = vst [vmem:[#allocation38 + $0x38] sm:$0xff] %v1427_v5   ;;  %1493 = vst [vmem:[#allocation40 + $0x20] sm:$0xff] %v1427_v5   ;;  %v90_v37 = vpack.c.bf16 %v1722_v25, %v88_v33  ;;  %v312_v38 = vsel %vm164_vm0, %v306_v19, %v1781_v2  ;;  %v333_v39 = vsel %vm164_vm0, %v327_v20, %v1781_v2  ;;  %vm530_vm3 = vcmp.lt.s32.totalorder %v1797_v11, 16 }
   0xd   :  { %1498 = vst [vmem:[#allocation40 + $0x28] sm:$0xff] %v1427_v5   ;;  %1503 = vst [vmem:[#allocation40 + $0x30] sm:$0xff] %v1427_v5   ;;  %v313_v40 = vpack.c.bf16 %v1722_v25, %v312_v38  ;;  %v335_v41 = vpack.c.bf16 %v1722_v25, %v333_v39  ;;  %v355_v42 = vsel %vm164_vm0, %v349_v24, %v1781_v2  ;;  %v1692_v63 = vld [vmem:[#allocation38 + $0x10] sm:$0xff]   ;;  %v1699_v15 = vld [vmem:[#allocation37 + $0x8] sm:$0xff]   ;;  %v568_v34 = vunpack.c.l.bf16 %v1383_v29 }
   0xe   :  { %1508 = vst [vmem:[#allocation40 + $0x38] sm:$0xff] %v1427_v5   ;;  %1513 = vst [vmem:[#allocation42 + $0x20] sm:$0xff] %v1427_v5   ;;  %v357_v44 = vpack.c.bf16 %v1722_v25, %v355_v42  ;;  %v377_v48 = vsel %vm164_vm0, %v371_v43, %v1781_v2  ;;  %v293_v50 = vsel %vm164_vm0, %v288_v23, %v1779_v1  ;;  %v1700_v16 = vld [vmem:[#allocation37 + $0x10] sm:$0xff]   ;;  %v1701_v17 = vld [vmem:[#allocation37 + $0x18] sm:$0xff]   ;;  %v590_v38 = vunpack.c.h.bf16 %v1383_v29 }
   0xf   :  { %1518 = vst [vmem:[#allocation42 + $0x28] sm:$0xff] %v1427_v5   ;;  %1523 = vst [vmem:[#allocation42 + $0x30] sm:$0xff] %v1427_v5   ;;  %v379_v51 = vpack.c.bf16 %v1722_v25, %v377_v48  ;;  %v399_v52 = vsel %vm164_vm0, %v393_v45, %v1781_v2  ;;  %v421_v53 = vsel %vm164_vm0, %v415_v46, %v1781_v2  ;;  %v1702_v18 = vld [vmem:[#allocation37 + $0x20] sm:$0xff]   ;;  %v1703_v19 = vld [vmem:[#allocation37 + $0x28] sm:$0xff]   ;;  %v612_v39 = vunpack.c.l.bf16 %v1385_v35 }
  0x10   :  { %1528 = vst [vmem:[#allocation42 + $0x38] sm:$0xff] %v1427_v5   ;;  %168 = vst [vmem:[#allocation38] sm:$0xf] %v166_v26  ;;  %v443_v54 = vsel %vm164_vm0, %v437_v47, %v1781_v2  ;;  %v401_v55 = vpack.c.bf16 %v1722_v25, %v399_v52  ;;  %v423_v56 = vpack.c.bf16 %v1722_v25, %v421_v53  ;;  %v1704_v20 = vld [vmem:[#allocation37 + $0x30] sm:$0xff]   ;;  %v1705_v21 = vld [vmem:[#allocation37 + $0x38] sm:$0xff]  }
  0x11   :  { %190 = vst [vmem:[#allocation38 + $0x4] sm:$0xf] %v188_v27  ;;  %212 = vst [vmem:[#allocation38 + $0x8] sm:$0xf] %v210_v30  ;;  %v445_v57 = vpack.c.bf16 %v1722_v25, %v443_v54  ;;  %v465_v58 = vsel %vm164_vm0, %v459_v49, %v1781_v2  ;;  %v1693_v0 = vld [vmem:[#allocation38 + $0x18] sm:$0xff]   ;;  %v1694_v5 = vld [vmem:[#allocation38 + $0x20] sm:$0xff]   ;;  %v726_v33 = vsel %vm287_vm1, %v721_v28, %v1779_v1 }
  0x12   :  { %234 = vst [vmem:[#allocation38 + $0xc] sm:$0xf] %v232_v31  ;;  %70 = vst [vmem:[#allocation37] sm:$0xf] %v68_v36  ;;  %v467_v59 = vpack.c.bf16 %v1722_v25, %v465_v58  ;;  %v1695_v7 = vld [vmem:[#allocation38 + $0x28] sm:$0xff]   ;;  %v1696_v9 = vld [vmem:[#allocation38 + $0x30] sm:$0xff]   ;;  %v574_v42 = vsel %vm530_vm3, %v568_v34, %v1781_v2  ;;  %v596_v46 = vsel %vm530_vm3, %v590_v38, %v1781_v2 }
  0x13   :  { %92 = vst [vmem:[#allocation37 + $0x4] sm:$0xf] %v90_v37  ;;  %315 = vst [vmem:[#allocation40] sm:$0xf] %v313_v40  ;;  %v1710_v10 = vld [vmem:[#allocation40 + $0x20] sm:$0xff]   ;;  %v1697_v12 = vld [vmem:[#allocation38 + $0x38] sm:$0xff]   ;;  %v731_v37 = vsel %vm530_vm3, %v726_v33, %v1779_v1  ;;  %v634_v40 = vunpack.c.h.bf16 %v1385_v35  ;;  %v576_v45 = vpack.c.bf16 %v1722_v25, %v574_v42  ;;  %v598_v47 = vpack.c.bf16 %v1722_v25, %v596_v46 }
  0x14   :  { %337 = vst [vmem:[#allocation40 + $0x4] sm:$0xf] %v335_v41  ;;  %359 = vst [vmem:[#allocation40 + $0x8] sm:$0xf] %v357_v44  ;;  %v1711_v14 = vld [vmem:[#allocation40 + $0x28] sm:$0xff]   ;;  %v1712_v22 = vld [vmem:[#allocation40 + $0x30] sm:$0xff]   ;;  %v618_v48 = vsel %vm530_vm3, %v612_v39, %v1781_v2 }
  0x15   :  { %295 = vst [vmem:[#allocation39] sm:$0x1] %v293_v50  ;;  %381 = vst [vmem:[#allocation40 + $0xc] sm:$0xf] %v379_v51  ;;  %v1713_v23 = vld [vmem:[#allocation40 + $0x38] sm:$0xff]   ;;  %v1387_v36 = vld [vmem:[%s2025_s4 + $0x18] sm:$0xff]   ;;  %v640_v49 = vsel %vm530_vm3, %v634_v40, %v1781_v2  ;;  %v620_v51 = vpack.c.bf16 %v1722_v25, %v618_v48 }
  0x16   :  { %403 = vst [vmem:[#allocation40 + $0x10] sm:$0xf] %v401_v55  ;;  %425 = vst [vmem:[#allocation40 + $0x14] sm:$0xf] %v423_v56  ;;  %v502_v24 = vld [vmem:[%s2028_s7] sm:$0x1]  ;;  %v656_v43 = vunpack.c.l.bf16 %v1387_v36  ;;  %v642_v52 = vpack.c.bf16 %v1722_v25, %v640_v49  ;;  %v678_v54 = vunpack.c.h.bf16 %v1387_v36 }
  0x17   :  { %447 = vst [vmem:[#allocation40 + $0x18] sm:$0xf] %v445_v57  ;;  %469 = vst [vmem:[#allocation40 + $0x1c] sm:$0xf] %v467_v59  ;;  %v507_v26 = vsel %vm287_vm1, %v502_v24, %v1779_v1  ;;  %v524_v27 = vld [vmem:[%s2025_s4] sm:$0xff]  }
  0x18   :  { %v1690_v60 = vld [vmem:[#allocation38] sm:$0xff]   ;;  %v512_v30 = vsel %vm164_vm0, %v507_v26, %v1779_v1  ;;  %v525_v31 = vunpack.c.l.bf16 %v524_v27  ;;  %v546_v32 = vunpack.c.h.bf16 %v524_v27  ;;  %733 = vst [vmem:[#allocation43] sm:$0x1] %v731_v37  ;;  %v662_v50 = vsel %vm530_vm3, %v656_v43, %v1781_v2  ;;  %578 = vst [vmem:[#allocation42 + $0x8] sm:$0xf] %v576_v45 }
  0x19   :  { %v1691_v61 = vld [vmem:[#allocation38 + $0x8] sm:$0xff]   ;;  %1577 = vmatprep.subr.bf16.mxu0 %v1690_v60  ;;  %514 = vst [vmem:[#allocation41] sm:$0x1] %v512_v30  ;;  %v664_v53 = vpack.c.bf16 %v1722_v25, %v662_v50  ;;  %600 = vst [vmem:[#allocation42 + $0xc] sm:$0xf] %v598_v47  ;;  %v684_v55 = vsel %vm530_vm3, %v678_v54, %v1781_v2 }
  0x1a   :  { %v1698_v62 = vld [vmem:[#allocation37] sm:$0xff]   ;;  %1578 = vmatpush3.bf16.msra.mxu0 %v1690_v60  ;;  %v531_v13 = vsel %vm530_vm3, %v525_v31, %v1781_v2  ;;  %v552_v41 = vsel %vm530_vm3, %v546_v32, %v1781_v2  ;;  %622 = vst [vmem:[#allocation42 + $0x10] sm:$0xf] %v620_v51  ;;  %644 = vst [vmem:[#allocation42 + $0x14] sm:$0xf] %v642_v52  ;;  %v686_v56 = vpack.c.bf16 %v1722_v25, %v684_v55  ;;  %v1944_v2 = vld [vmem:[#allocation42 + $0x28] sm:$0xff]  }
  0x1b   :  { %1579 = vmatprep.subr.bf16.mxu0 %v1691_v61  ;;  %1593 = vmatprep.mubr.bf16.mxu0 %v1698_v62  ;;  %v1706_v3 = vld [vmem:[#allocation40] sm:$0xff]   ;;  %v532_v44 = vpack.c.bf16 %v1722_v25, %v531_v13  ;;  %v554_v1 = vpack.c.bf16 %v1722_v25, %v552_v41  ;;  %666 = vst [vmem:[#allocation42 + $0x18] sm:$0xf] %v664_v53 }
  0x1c   :  { %v1707_v4 = vld [vmem:[#allocation40 + $0x8] sm:$0xff]   ;;  %1609 = vmatprep.subr.bf16.mxu1 %v1706_v3  ;;  %688 = vst [vmem:[#allocation42 + $0x1c] sm:$0xf] %v686_v56  ;;  %v1949_v11 = vld [vmem:[#allocation39] ss:$0 sm:$0xff]  ;;  %v1720_v56 = vld [vmem:[#allocation42 + $0x30] sm:$0xff]  }
  0x1d   :  { %1610 = vmatpush3.bf16.msra.mxu1 %v1706_v3  ;;  %v1708_v6 = vld [vmem:[#allocation40 + $0x10] sm:$0xff]   ;;  %534 = vst [vmem:[#allocation42] sm:$0xf] %v532_v44  ;;  %556 = vst [vmem:[#allocation42 + $0x4] sm:$0xf] %v554_v1 }
  0x1e   :  { %1580 = vmatpush3.bf16.msra.mxu0 %v1691_v61  ;;  %1611 = vmatprep.subr.bf16.mxu1 %v1707_v4  ;;  %v1709_v8 = vld [vmem:[#allocation40 + $0x18] sm:$0xff]   ;;  %v1940_v61 = vld [vmem:[#allocation42 + $0x20] sm:$0xff]  }
  0x1f   :  { %1581 = vmatprep.subr.bf16.mxu0 %v1692_v63 }
  0x20   :  { %v1715_v58 = vld [vmem:[#allocation42 + $0x8] sm:$0xff]  }
  0x21   :  { %1612 = vmatpush3.bf16.msra.mxu1 %v1707_v4  ;;  %v1716_v59 = vld [vmem:[#allocation42 + $0x10] sm:$0xff]  }
  0x22   :  { %1582 = vmatpush3.bf16.msra.mxu0 %v1692_v63  ;;  %1613 = vmatprep.subr.bf16.mxu1 %v1708_v6 }
  0x23   :  { %1583 = vmatprep.subr.bf16.mxu0 %v1693_v0  ;;  %v1937_v60 = vld [vmem:[#allocation42 + $0x18] sm:$0xff]  }
  0x24   :  { %v1714_v57 = vld [vmem:[#allocation42] sm:$0xff]  }
  0x25   :  { %1614 = vmatpush3.bf16.msra.mxu1 %v1708_v6 }
  0x26   :  { %1584 = vmatpush3.bf16.msra.mxu0 %v1693_v0  ;;  %1615 = vmatprep.subr.bf16.mxu1 %v1709_v8 }
  0x27   :  { %1585 = vmatprep.subr.bf16.mxu0 %v1694_v5 }
  0x29   :  { %1616 = vmatpush3.bf16.msra.mxu1 %v1709_v8 }
  0x2a   :  { %1586 = vmatpush3.bf16.msra.mxu0 %v1694_v5  ;;  %1617 = vmatprep.subr.bf16.mxu1 %v1710_v10 }
  0x2b   :  { %1587 = vmatprep.subr.bf16.mxu0 %v1695_v7 }
  0x2d   :  { %1618 = vmatpush3.bf16.msra.mxu1 %v1710_v10 }
  0x2e   :  { %1588 = vmatpush3.bf16.msra.mxu0 %v1695_v7  ;;  %1619 = vmatprep.subr.bf16.mxu1 %v1711_v14 }
  0x2f   :  { %1589 = vmatprep.subr.bf16.mxu0 %v1696_v9 }
  0x31   :  { %1620 = vmatpush3.bf16.msra.mxu1 %v1711_v14 }
  0x32   :  { %1590 = vmatpush3.bf16.msra.mxu0 %v1696_v9  ;;  %1621 = vmatprep.subr.bf16.mxu1 %v1712_v22 }
  0x33   :  { %1591 = vmatprep.subr.bf16.mxu0 %v1697_v12 }
  0x35   :  { %1622 = vmatpush3.bf16.msra.mxu1 %v1712_v22 }
  0x36   :  { %1592 = vmatpush3.bf16.msra.mxu0 %v1697_v12  ;;  %1623 = vmatprep.subr.bf16.mxu1 %v1713_v23 }
  0x37   :  { %1641 = vmatprep.subr.bf16.mxu0 %v1714_v57 }
  0x39   :  { %1594 = vmatmul.mubr.bf16.vlgmr.msra.gmra.mrb[0].mxu0 %v1699_v15  ;;  %1624 = vmatpush3.bf16.msra.mxu1 %v1713_v23 }
  0x3a   :  { %1597 = vmatprep.mubr.bf16.mxu0 %v1700_v16  ;;  %1673 = vmatprep.subr.bf16.mxu1 %v1714_v57 }
  0x3b   :  { %1642 = vmatpush3.bf16.msra.mxu0 %v1714_v57 }
  0x3c   :  { %1643 = vmatprep.subr.bf16.mxu0 %v1715_v58 }
  0x3f   :  { %1644 = vmatpush3.bf16.msra.mxu0 %v1715_v58 }
  0x40   :  { %1645 = vmatprep.subr.bf16.mxu0 %v1716_v59 }
  0x41   :  { %1598 = vmatmul.mubr.bf16.gmra.mrb[4].mxu0 %v1701_v17 }
  0x42   :  { %1601 = vmatprep.mubr.bf16.mxu0 %v1702_v18 }
  0x43   :  { %1646 = vmatpush3.bf16.msra.mxu0 %v1716_v59 }
  0x44   :  { %1647 = vmatprep.subr.bf16.mxu0 %v1937_v60 }
  0x47   :  { %1648 = vmatpush3.bf16.msra.mxu0 %v1937_v60 }
  0x48   :  { %1649 = vmatprep.subr.bf16.mxu0 %v1940_v61 }
  0x49   :  { %1602 = vmatmul.mubr.bf16.gmra.mrb[8].mxu0 %v1703_v19 }
  0x4a   :  { %1605 = vmatprep.mubr.bf16.mxu0 %v1704_v20 }
  0x4b   :  { %1650 = vmatpush3.bf16.msra.mxu0 %v1940_v61 }
  0x4c   :  { %1651 = vmatprep.subr.bf16.mxu0 %v1944_v2 }
  0x4f   :  { %1652 = vmatpush3.bf16.msra.mxu0 %v1944_v2 }
  0x50   :  { %1653 = vmatprep.subr.bf16.mxu0 %v1720_v56 }
  0x51   :  { %1606 = vmatmul.mubr.bf16.gmra.mrb[12].mxu0 %v1705_v21 }
  0x53   :  { %1654 = vmatpush3.bf16.msra.mxu0 %v1720_v56 }
 0x10c   :  { %v1595_v25 = vpop.f32.mrb[0].mxu0 }
 0x10d   :  { %v913_v62 = vadd.f32 %v1595_v25, %v1949_v11  ;;  %v904_v63 = vpop.f32.mrb[1].mxu0 }
 0x10e   :  { %v905_v0 = vadd.f32 %v1949_v11, %v904_v63  ;;  %v1596_v3 = vpop.f32.mrb[2].mxu0 }
 0x10f   :  { %v916_v4 = vadd.f32 %v1596_v3, %v1949_v11  ;;  %v907_v5 = vpop.f32.mrb[3].mxu0  ;;  %v969_v7 = vmax.f32 %v913_v62, 0.0 }
 0x110   :  { %v908_v6 = vadd.f32 %v1949_v11, %v907_v5  ;;  %v967_v9 = vmax.f32 %v905_v0, 0.0 }
 0x111   :  { %v970_v8 = vmax.f32 %v916_v4, 0.0 }
 0x112   :  { %v968_v10 = vmax.f32 %v908_v6, 0.0 }
 0x113   :  { %v984_v12 = vpack.c.bf16 %v970_v8, %v969_v7 }
 0x114   :  { %v1599_v14 = vpop.f32.mrb[4].mxu0  ;;  %v983_v15 = vpack.c.bf16 %v968_v10, %v967_v9 }
 0x115   :  { %v929_v16 = vadd.f32 %v1599_v14, %v1949_v11  ;;  %v920_v17 = vpop.f32.mrb[5].mxu0 }
 0x116   :  { %v921_v18 = vadd.f32 %v1949_v11, %v920_v17  ;;  %v1600_v19 = vpop.f32.mrb[6].mxu0  ;;  %1625 = vmatprep.mubr.bf16.mxu1 %v983_v15 }
 0x117   :  { %v932_v20 = vadd.f32 %v1600_v19, %v1949_v11  ;;  %v923_v21 = vpop.f32.mrb[7].mxu0  ;;  %1626 = vmatmul.mubr.bf16.vlgmr.msra.gmra.mrb[0].mxu1 %v984_v12  ;;  %v973_v23 = vmax.f32 %v929_v16, 0.0 }
 0x118   :  { %v924_v22 = vadd.f32 %v1949_v11, %v923_v21  ;;  %1681 = vmatpush3.bf16.msra.mxu1 %v1714_v57  ;;  %v971_v26 = vmax.f32 %v921_v18, 0.0  ;;  %v1721_v57 = vld [vmem:[#allocation42 + $0x38] sm:$0xff]  }
 0x119   :  { %v974_v24 = vmax.f32 %v932_v20, 0.0  ;;  %1674 = vmatprep.subr.bf16.mxu1 %v1715_v58  ;;  %1655 = vmatprep.subr.bf16.mxu0 %v1721_v57 }
 0x11a   :  { %v972_v27 = vmax.f32 %v924_v22, 0.0  ;;  %1656 = vmatpush3.bf16.msra.mxu0 %v1721_v57 }
 0x11b   :  { %v986_v28 = vpack.c.bf16 %v974_v24, %v973_v23 }
 0x11c   :  { %v985_v29 = vpack.c.bf16 %v972_v27, %v971_v26  ;;  %v1603_v30 = vpop.f32.mrb[8].mxu0  ;;  %1682 = vmatpush3.bf16.msra.mxu1 %v1715_v58  ;;  %v1406_v58 = vld [vmem:[#allocation41] ss:$0 sm:$0xff] }
 0x11d   :  { %v945_v31 = vadd.f32 %v1603_v30, %v1949_v11  ;;  %v936_v32 = vpop.f32.mrb[9].mxu0  ;;  %1675 = vmatprep.subr.bf16.mxu1 %v1716_v59 }
 0x11e   :  { %v937_v33 = vadd.f32 %v1949_v11, %v936_v32  ;;  %v1604_v34 = vpop.f32.mrb[10].mxu0  ;;  %1629 = vmatprep.mubr.bf16.mxu1 %v985_v29 }
 0x11f   :  { %v948_v35 = vadd.f32 %v1604_v34, %v1949_v11  ;;  %v939_v36 = vpop.f32.mrb[11].mxu0  ;;  %1630 = vmatmul.mubr.bf16.gmra.mrb[4].mxu1 %v986_v28  ;;  %v977_v38 = vmax.f32 %v945_v31, 0.0 }
 0x120   :  { %v940_v37 = vadd.f32 %v1949_v11, %v939_v36  ;;  %1683 = vmatpush3.bf16.msra.mxu1 %v1716_v59  ;;  %v975_v40 = vmax.f32 %v937_v33, 0.0 }
 0x121   :  { %v978_v39 = vmax.f32 %v948_v35, 0.0  ;;  %1676 = vmatprep.subr.bf16.mxu1 %v1937_v60 }
 0x122   :  { %v976_v13 = vmax.f32 %v940_v37, 0.0 }
 0x123   :  { %v988_v41 = vpack.c.bf16 %v978_v39, %v977_v38 }
 0x124   :  { %v987_v42 = vpack.c.bf16 %v976_v13, %v975_v40  ;;  %v1607_v43 = vpop.f32.mrb[12].mxu0  ;;  %1684 = vmatpush3.bf16.msra.mxu1 %v1937_v60 }
 0x125   :  { %v961_v44 = vadd.f32 %v1607_v43, %v1949_v11  ;;  %v952_v1 = vpop.f32.mrb[13].mxu0  ;;  %1677 = vmatprep.subr.bf16.mxu1 %v1940_v61 }
 0x126   :  { %v953_v45 = vadd.f32 %v1949_v11, %v952_v1  ;;  %v1608_v46 = vpop.f32.mrb[14].mxu0  ;;  %1633 = vmatprep.mubr.bf16.mxu1 %v987_v42 }
 0x127   :  { %v964_v47 = vadd.f32 %v1608_v46, %v1949_v11  ;;  %v955_v48 = vpop.f32.mrb[15].mxu0  ;;  %1634 = vmatmul.mubr.bf16.gmra.mrb[8].mxu1 %v988_v41  ;;  %v981_v50 = vmax.f32 %v961_v44, 0.0 }
 0x128   :  { %v956_v49 = vadd.f32 %v1949_v11, %v955_v48  ;;  %1685 = vmatpush3.bf16.msra.mxu1 %v1940_v61  ;;  %v979_v52 = vmax.f32 %v953_v45, 0.0 }
 0x129   :  { %v982_v51 = vmax.f32 %v964_v47, 0.0  ;;  %1678 = vmatprep.subr.bf16.mxu1 %v1944_v2 }
 0x12a   :  { %v980_v53 = vmax.f32 %v956_v49, 0.0 }
 0x12b   :  { %v990_v54 = vpack.c.bf16 %v982_v51, %v981_v50  ;;  %v1415_v51 = vld [vmem:[#allocation43] ss:$0 sm:$0xff] }
 0x12c   :  { %v989_v55 = vpack.c.bf16 %v980_v53, %v979_v52  ;;  %1686 = vmatpush3.bf16.msra.mxu1 %v1944_v2 }
 0x12d   :  { %1679 = vmatprep.subr.bf16.mxu1 %v1720_v56 }
 0x12e   :  { %1637 = vmatprep.mubr.bf16.mxu1 %v989_v55 }
 0x12f   :  { %1638 = vmatmul.mubr.bf16.gmra.mrb[12].mxu1 %v990_v54 }
 0x130   :  { %1687 = vmatpush3.bf16.msra.mxu1 %v1720_v56 }
 0x131   :  { %1680 = vmatprep.subr.bf16.mxu1 %v1721_v57 }
 0x134   :  { %1688 = vmatpush3.bf16.msra.mxu1 %v1721_v57 }
 0x1ea   :  { %v1627_v59 = vpop.f32.mrb[0].mxu1 }
 0x1eb   :  { %v1105_v60 = vadd.f32 %v1627_v59, %v1406_v58  ;;  %v1096_v61 = vpop.f32.mrb[1].mxu1 }
 0x1ec   :  { %v1097_v11 = vadd.f32 %v1406_v58, %v1096_v61  ;;  %v1628_v25 = vpop.f32.mrb[2].mxu1 }
 0x1ed   :  { %v1108_v62 = vadd.f32 %v1628_v25, %v1406_v58  ;;  %v1099_v2 = vpop.f32.mrb[3].mxu1  ;;  %v1161_v0 = vmax.f32 %v1105_v60, 0.0 }
 0x1ee   :  { %v1100_v63 = vadd.f32 %v1406_v58, %v1099_v2  ;;  %v1159_v4 = vmax.f32 %v1097_v11, 0.0 }
 0x1ef   :  { %v1162_v3 = vmax.f32 %v1108_v62, 0.0 }
 0x1f0   :  { %v1160_v5 = vmax.f32 %v1100_v63, 0.0 }
 0x1f1   :  { %v1176_v6 = vpack.c.bf16 %v1162_v3, %v1161_v0 }
 0x1f2   :  { %v1175_v7 = vpack.c.bf16 %v1160_v5, %v1159_v4  ;;  %v1631_v8 = vpop.f32.mrb[4].mxu1 }
 0x1f3   :  { %v1121_v9 = vadd.f32 %v1631_v8, %v1406_v58  ;;  %v1112_v10 = vpop.f32.mrb[5].mxu1 }
 0x1f4   :  { %v1113_v12 = vadd.f32 %v1406_v58, %v1112_v10  ;;  %v1632_v14 = vpop.f32.mrb[6].mxu1  ;;  %1657 = vmatprep.mubr.bf16.mxu0 %v1175_v7 }
 0x1f5   :  { %v1124_v15 = vadd.f32 %v1632_v14, %v1406_v58  ;;  %v1115_v16 = vpop.f32.mrb[7].mxu1  ;;  %1658 = vmatmul.mubr.bf16.vlgmr.msra.gmra.mrb[16].mxu0 %v1176_v6  ;;  %v1165_v18 = vmax.f32 %v1121_v9, 0.0 }
 0x1f6   :  { %v1116_v17 = vadd.f32 %v1406_v58, %v1115_v16  ;;  %v1163_v20 = vmax.f32 %v1113_v12, 0.0 }
 0x1f7   :  { %v1166_v19 = vmax.f32 %v1124_v15, 0.0 }
 0x1f8   :  { %v1164_v21 = vmax.f32 %v1116_v17, 0.0 }
 0x1f9   :  { %v1178_v22 = vpack.c.bf16 %v1166_v19, %v1165_v18 }
 0x1fa   :  { %v1177_v23 = vpack.c.bf16 %v1164_v21, %v1163_v20  ;;  %v1635_v24 = vpop.f32.mrb[8].mxu1 }
 0x1fb   :  { %v1137_v26 = vadd.f32 %v1635_v24, %v1406_v58  ;;  %v1128_v27 = vpop.f32.mrb[9].mxu1 }
 0x1fc   :  { %v1129_v28 = vadd.f32 %v1406_v58, %v1128_v27  ;;  %v1636_v29 = vpop.f32.mrb[10].mxu1  ;;  %1661 = vmatprep.mubr.bf16.mxu0 %v1177_v23 }
 0x1fd   :  { %v1140_v30 = vadd.f32 %v1636_v29, %v1406_v58  ;;  %v1131_v31 = vpop.f32.mrb[11].mxu1  ;;  %1662 = vmatmul.mubr.bf16.gmra.mrb[20].mxu0 %v1178_v22  ;;  %v1169_v33 = vmax.f32 %v1137_v26, 0.0 }
 0x1fe   :  { %v1132_v32 = vadd.f32 %v1406_v58, %v1131_v31  ;;  %v1167_v35 = vmax.f32 %v1129_v28, 0.0 }
 0x1ff   :  { %v1170_v34 = vmax.f32 %v1140_v30, 0.0 }
 0x200   :  { %v1168_v36 = vmax.f32 %v1132_v32, 0.0 }
 0x201   :  { %v1180_v37 = vpack.c.bf16 %v1170_v34, %v1169_v33 }
 0x202   :  { %v1179_v38 = vpack.c.bf16 %v1168_v36, %v1167_v35  ;;  %v1639_v39 = vpop.f32.mrb[12].mxu1 }
 0x203   :  { %v1153_v40 = vadd.f32 %v1639_v39, %v1406_v58  ;;  %v1144_v13 = vpop.f32.mrb[13].mxu1 }
 0x204   :  { %v1145_v41 = vadd.f32 %v1406_v58, %v1144_v13  ;;  %v1640_v42 = vpop.f32.mrb[14].mxu1  ;;  %1665 = vmatprep.mubr.bf16.mxu1 %v1179_v38 }
 0x205   :  { %v1156_v43 = vadd.f32 %v1640_v42, %v1406_v58  ;;  %v1147_v44 = vpop.f32.mrb[15].mxu1  ;;  %1666 = vmatmul.mubr.bf16.vlgmr.msra.gmra.mrb[16].mxu1 %v1180_v37  ;;  %v1173_v45 = vmax.f32 %v1153_v40, 0.0 }
 0x206   :  { %v1148_v1 = vadd.f32 %v1406_v58, %v1147_v44  ;;  %v1171_v47 = vmax.f32 %v1145_v41, 0.0 }
 0x207   :  { %v1174_v46 = vmax.f32 %v1156_v43, 0.0 }
 0x208   :  { %v1172_v48 = vmax.f32 %v1148_v1, 0.0 }
 0x209   :  { %v1182_v49 = vpack.c.bf16 %v1174_v46, %v1173_v45 }
 0x20a   :  { %v1181_v50 = vpack.c.bf16 %v1172_v48, %v1171_v47 }
 0x20c   :  { %1669 = vmatprep.mubr.bf16.mxu1 %v1181_v50 }
 0x20d   :  { %1670 = vmatmul.mubr.bf16.gmra.mrb[20].mxu1 %v1182_v49 }
 0x2c8   :  { %v1659_v52 = vpop.f32.mrb[16].mxu0 }
 0x2c9   :  { %v1297_v53 = vadd.f32 %v1659_v52, %v1415_v51  ;;  %v1288_v54 = vpop.f32.mrb[17].mxu0 }
 0x2ca   :  { %v1289_v55 = vadd.f32 %v1415_v51, %v1288_v54  ;;  %v1660_v56 = vpop.f32.mrb[18].mxu0 }
 0x2cb   :  { %1353 = vst [vmem:[%s2030_s9 + $0x10] sm:$0xff] %v1297_v53  ;;  %v1300_v57 = vadd.f32 %v1660_v56, %v1415_v51  ;;  %v1291_v58 = vpop.f32.mrb[19].mxu0 }
 0x2cc   :  { %1351 = vst [vmem:[%s2030_s9] sm:$0xff] %v1289_v55  ;;  %v1292_v59 = vadd.f32 %v1415_v51, %v1291_v58 }
 0x2cd   :  { %1354 = vst [vmem:[%s2030_s9 + $0x18] sm:$0xff] %v1300_v57 }
 0x2ce   :  { %1352 = vst [vmem:[%s2030_s9 + $0x8] sm:$0xff] %v1292_v59 }
 0x2d0   :  { %v1663_v60 = vpop.f32.mrb[20].mxu0 }
 0x2d1   :  { %v1313_v61 = vadd.f32 %v1663_v60, %v1415_v51  ;;  %v1304_v11 = vpop.f32.mrb[21].mxu0 }
 0x2d2   :  { %v1305_v25 = vadd.f32 %v1415_v51, %v1304_v11  ;;  %v1664_v62 = vpop.f32.mrb[22].mxu0 }
 0x2d3   :  { %1357 = vst [vmem:[%s2030_s9 + $0x30] sm:$0xff] %v1313_v61  ;;  %v1316_v2 = vadd.f32 %v1664_v62, %v1415_v51  ;;  %v1307_v63 = vpop.f32.mrb[23].mxu0 }
 0x2d4   :  { %1355 = vst [vmem:[%s2030_s9 + $0x20] sm:$0xff] %v1305_v25  ;;  %v1308_v0 = vadd.f32 %v1415_v51, %v1307_v63 }
 0x2d5   :  { %1358 = vst [vmem:[%s2030_s9 + $0x38] sm:$0xff] %v1316_v2 }
 0x2d6   :  { %1356 = vst [vmem:[%s2030_s9 + $0x28] sm:$0xff] %v1308_v0 }
 0x2d8   :  { %v1667_v3 = vpop.f32.mrb[16].mxu1 }
 0x2d9   :  { %v1329_v4 = vadd.f32 %v1667_v3, %v1415_v51  ;;  %v1320_v5 = vpop.f32.mrb[17].mxu1 }
 0x2da   :  { %v1321_v6 = vadd.f32 %v1415_v51, %v1320_v5  ;;  %v1668_v7 = vpop.f32.mrb[18].mxu1 }
 0x2db   :  { %1361 = vst [vmem:[%s2030_s9 + $0x50] sm:$0xff] %v1329_v4  ;;  %v1332_v8 = vadd.f32 %v1668_v7, %v1415_v51  ;;  %v1323_v9 = vpop.f32.mrb[19].mxu1 }
 0x2dc   :  { %1359 = vst [vmem:[%s2030_s9 + $0x40] sm:$0xff] %v1321_v6  ;;  %v1324_v10 = vadd.f32 %v1415_v51, %v1323_v9 }
 0x2dd   :  { %1362 = vst [vmem:[%s2030_s9 + $0x58] sm:$0xff] %v1332_v8 }
 0x2de   :  { %1360 = vst [vmem:[%s2030_s9 + $0x48] sm:$0xff] %v1324_v10 }
 0x2e0   :  { %v1671_v12 = vpop.f32.mrb[20].mxu1 }
 0x2e1   :  { %v1345_v14 = vadd.f32 %v1671_v12, %v1415_v51  ;;  %v1336_v15 = vpop.f32.mrb[21].mxu1 }
 0x2e2   :  { %v1337_v16 = vadd.f32 %v1415_v51, %v1336_v15  ;;  %v1672_v17 = vpop.f32.mrb[22].mxu1 }
 0x2e3   :  { %1365 = vst [vmem:[%s2030_s9 + $0x70] sm:$0xff] %v1345_v14  ;;  %v1348_v18 = vadd.f32 %v1672_v17, %v1415_v51  ;;  %v1339_v19 = vpop.f32.mrb[23].mxu1 }
 0x2e4   :  { %1363 = vst [vmem:[%s2030_s9 + $0x60] sm:$0xff] %v1337_v16  ;;  %v1340_v20 = vadd.f32 %v1415_v51, %v1339_v19 }
 0x2e5   :  { %1366 = vst [vmem:[%s2030_s9 + $0x78] sm:$0xff] %v1348_v18 }
 0x2e6   :  { %1364 = vst [vmem:[%s2030_s9 + $0x68] sm:$0xff] %v1340_v20 }

</bundles_post_ra>
